<compile_context>
chip_gen: v5e
topology: v5e:2x2
jax: 0.10.0
libtpu: 0.0.40
codegen_flags: <defaults>
</compile_context>

<pallas_src>
import numpy as np
import jax
import jax.numpy as jnp
from jax.experimental import pallas as pl
from jax.experimental.pallas import tpu as pltpu

_L = 128  # lane block: every per-direction vector lives in one full 128-lane block


def bilstm_seq_kernel(x_ref, h0_ref, c0_ref, wx_ref, wh_ref, wyt_ref, by_ref,
                      out_ref, h_state, c_state):
    """One timestep per grid iteration; h/c carried across steps in VMEM scratch."""
    L = _L
    t = pl.program_id(0)

    @pl.when(t == 0)
    def _():
        h_state[...] = h0_ref[...]
        c_state[...] = c0_ref[...]

    # Fused gate pre-activations for BOTH directions in one block-diagonal MXU pass:
    #   z = [f_f | i_f | o_f | cc_f | f_b | i_b | o_b | cc_b], each block 128 lanes.
    # Biases are already folded into wx via the constant-1.0 lane of x.
    z = (jnp.dot(x_ref[...], wx_ref[...], preferred_element_type=jnp.float32) +
         jnp.dot(h_state[...], wh_ref[...], preferred_element_type=jnp.float32))

    def gates(off):
        fg = jax.nn.sigmoid(z[:, off + 0 * L: off + 1 * L])
        ig = jax.nn.sigmoid(z[:, off + 1 * L: off + 2 * L])
        og = jax.nn.sigmoid(z[:, off + 2 * L: off + 3 * L])
        cc = jnp.tanh(z[:, off + 3 * L: off + 4 * L])
        return fg, ig, og, cc

    fg_f, ig_f, og_f, cc_f = gates(0)
    fg_b, ig_b, og_b, cc_b = gates(4 * L)

    c_prev_f = c_state[:, 0:L]
    c_prev_b = c_state[:, L:2 * L]

    nc_f = fg_f * c_prev_f + ig_f * cc_f
    nh_f = og_f * jnp.tanh(nc_f)
    nc_b = fg_b * c_prev_b + ig_b * cc_b
    # NOTE: reproduces the reference module verbatim (uses next_c_f, not next_c_b).
    nh_b = og_b * jnp.tanh(nc_f)

    # carry states to the next grid step (lane-block concat: no cross-lane movement)
    c_state[...] = jnp.concatenate([nc_f, nc_b], axis=-1)
    nh_full = jnp.concatenate([nh_f, nh_b], axis=-1)
    h_state[...] = nh_full

    # output projection: (1, 256) @ (256, 128)
    y = jnp.dot(nh_full, wyt_ref[...], preferred_element_type=jnp.float32) + by_ref[...]

    # pack all 13 per-step outputs into one lane-dense (16, 128) slab -> single writeback
    out_ref[0:1, :] = nh_f
    out_ref[1:2, :] = nc_f
    out_ref[2:3, :] = y
    out_ref[3:4, :] = fg_f
    out_ref[4:5, :] = ig_f
    out_ref[5:6, :] = og_f
    out_ref[6:7, :] = cc_f
    out_ref[7:8, :] = nh_b
    out_ref[8:9, :] = nc_b
    out_ref[9:10, :] = fg_b
    out_ref[10:11, :] = ig_b
    out_ref[11:12, :] = og_b
    out_ref[12:13, :] = cc_b
    out_ref[13:16, :] = jnp.zeros((3, L), jnp.float32)


class BiLSTMPallas:
    """Deterministic re-implementation of BiLSTM.forward using a fused Pallas TPU kernel."""

    def __init__(self, hidden_size, vocab_size, key):
        H, V, L = hidden_size, vocab_size, _L
        assert H <= L and V + 1 <= L, "this packing assumes hidden_size<=128, vocab_size<128"
        self.hidden_size, self.vocab_size = H, V
        keys = jax.random.split(key, 9)

        def w(k):  # matches np.random.randn(H, H+V) * 0.01
            return jax.random.normal(k, (H, H + V), jnp.float32) * 0.01

        self.Wf_f, self.Wi_f, self.Wo_f, self.Wcc_f = (w(keys[i]) for i in range(4))
        self.Wf_b, self.Wi_b, self.Wo_b, self.Wcc_b = (w(keys[i]) for i in range(4, 8))
        self.Wy = jax.random.normal(keys[8], (V, 2 * H), jnp.float32) * 0.01
        zH = jnp.zeros((H, 1), jnp.float32)
        self.bf_f = self.bi_f = self.bo_f = self.bcc_f = zH
        self.bf_b = self.bi_b = self.bo_b = self.bcc_b = zH
        self.by = jnp.zeros((V, 1), jnp.float32)

        # ---- host-side packing into lane-aligned MXU slabs (glue, plain numpy) ----
        # Wx: (2L, 8L)  rows = [x_f block | x_b block]; cols = 8 gate blocks
        #     (f_f, i_f, o_f, cc_f, f_b, i_b, o_b, cc_b), each 128 lanes wide
        #     (only the first H columns of each block are nonzero).
        # Wh: (2L, 8L)  rows = [h_f block | h_b block], same column layout.
        # Gate biases live in Wx row V (fwd) / row L+V (bwd), hit by a constant-1 x lane.
        Wx = np.zeros((2 * L, 8 * L), np.float32)
        Wh = np.zeros((2 * L, 8 * L), np.float32)
        gates_f = [(self.Wf_f, self.bf_f), (self.Wi_f, self.bi_f),
                   (self.Wo_f, self.bo_f), (self.Wcc_f, self.bcc_f)]
        gates_b = [(self.Wf_b, self.bf_b), (self.Wi_b, self.bi_b),
                   (self.Wo_b, self.bo_b), (self.Wcc_b, self.bcc_b)]
        for d, gates in enumerate((gates_f, gates_b)):
            r0 = d * L          # row block of this direction
            c0 = d * 4 * L      # column block of this direction's 4 gates
            for g, (Wg, bg) in enumerate(gates):
                Wg, bg = np.asarray(Wg), np.asarray(bg)
                cols = slice(c0 + g * L, c0 + g * L + H)
                Wx[r0:r0 + V, cols] = Wg[:, :V].T     # x part
                Wx[r0 + V, cols] = bg[:, 0]           # bias row (constant-1 lane)
                Wh[r0:r0 + H, cols] = Wg[:, V:].T     # h part

        WyT = np.zeros((2 * L, L), np.float32)
        Wy_np = np.asarray(self.Wy)
        WyT[0:H, 0:V] = Wy_np[:, 0:H].T
        WyT[L:L + H, 0:V] = Wy_np[:, H:2 * H].T
        by_row = np.zeros((1, L), np.float32)
        by_row[0, :V] = np.asarray(self.by)[:, 0]

        self.Wx_big = jnp.asarray(Wx)
        self.Wh_big = jnp.asarray(Wh)
        self.WyT_big = jnp.asarray(WyT)
        self.by_big = jnp.asarray(by_row)

    def forward_sequence(self, xs_f, xs_b, hprev_f, hprev_b, cprev_f, cprev_b):
        """xs_f, xs_b: (T, V, 1); states: (H, 1).  Returns 13 arrays of shape (T, D)."""
        H, V, L = self.hidden_size, self.vocab_size, _L
        f32 = jnp.float32
        xs_f = jnp.asarray(xs_f, f32)
        xs_b = jnp.asarray(xs_b, f32)
        T = xs_f.shape[0]

        # pack x for both directions + constant-1 bias lanes into (T, 1, 256)
        x_pk = jnp.zeros((T, 1, 2 * L), f32)
        x_pk = x_pk.at[:, 0, 0:V].set(xs_f[:, :, 0])
        x_pk = x_pk.at[:, 0, V].set(1.0)                  # bias lane (forward)
        x_pk = x_pk.at[:, 0, L:L + V].set(xs_b[:, :, 0])
        x_pk = x_pk.at[:, 0, L + V].set(1.0)              # bias lane (backward)

        def pack_state(a_f, a_b):
            s = jnp.zeros((1, 2 * L), f32)
            s = s.at[0, 0:H].set(jnp.asarray(a_f, f32)[:, 0])
            s = s.at[0, L:L + H].set(jnp.asarray(a_b, f32)[:, 0])
            return s

        h0 = pack_state(hprev_f, hprev_b)
        c0 = pack_state(cprev_f, cprev_b)

        slab = pl.pallas_call(
            bilstm_seq_kernel,
            out_shape=jax.ShapeDtypeStruct((T, 16, L), f32),
            grid=(T,),
            in_specs=[
                pl.BlockSpec((None, 1, 2 * L), lambda t: (t, 0, 0)),   # x_t (streamed)
                pl.BlockSpec((1, 2 * L), lambda t: (0, 0)),            # h0 (resident)
                pl.BlockSpec((1, 2 * L), lambda t: (0, 0)),            # c0 (resident)
                pl.BlockSpec((2 * L, 8 * L), lambda t: (0, 0)),        # Wx (resident)
                pl.BlockSpec((2 * L, 8 * L), lambda t: (0, 0)),        # Wh (resident)
                pl.BlockSpec((2 * L, L), lambda t: (0, 0)),            # WyT (resident)
                pl.BlockSpec((1, L), lambda t: (0, 0)),                # by (resident)
            ],
            out_specs=pl.BlockSpec((None, 16, L), lambda t: (t, 0, 0)),
            scratch_shapes=[pltpu.VMEM((1, 2 * L), f32),               # h state carry
                            pltpu.VMEM((1, 2 * L), f32)],              # c state carry
            compiler_params=pltpu.CompilerParams(
                dimension_semantics=("arbitrary",)),                   # sequential recurrence
        )(x_pk, h0, c0, self.Wx_big, self.Wh_big, self.WyT_big, self.by_big)

        def rH(i):
            return slab[:, i, :H]

        def rV(i):
            return slab[:, i, :V]

        return (rH(0), rH(1), rV(2), rH(3), rH(4), rH(5), rH(6),
                rH(7), rH(8), rH(9), rH(10), rH(11), rH(12))

    def forward(self, x_f, x_b, hprev_f, hprev_b, cprev_f, cprev_b):
        """Single step with the original module signature; returns (D, 1) column vectors."""
        seq = self.forward_sequence(jnp.asarray(x_f, jnp.float32)[None],
                                    jnp.asarray(x_b, jnp.float32)[None],
                                    hprev_f, hprev_b, cprev_f, cprev_b)
        return tuple(o[0][:, None] for o in seq)


# ----------------------------- numpy reference ---------------------------------
def _np_sigmoid(z):
    with np.errstate(over='ignore', invalid='ignore'):
        return np.where(z >= 0, 1.0 / (1.0 + np.exp(-z)), np.exp(z) / (1.0 + np.exp(z)))


def _np_forward_step(m, x_f, x_b, hprev_f, hprev_b, cprev_f, cprev_b):
    A = lambda a: np.asarray(a, np.float64)
    xh_f = np.vstack((x_f, hprev_f))
    forget_f = _np_sigmoid(A(m.Wf_f) @ xh_f + A(m.bf_f))
    input_f = _np_sigmoid(A(m.Wi_f) @ xh_f + A(m.bi_f))
    output_f = _np_sigmoid(A(m.Wo_f) @ xh_f + A(m.bo_f))
    c_hat_f = np.tanh(A(m.Wcc_f) @ xh_f + A(m.bcc_f))
    next_c_f = forget_f * cprev_f + input_f * c_hat_f
    next_h_f = output_f * np.tanh(next_c_f)
    xh_b = np.vstack((x_b, hprev_b))
    forget_b = _np_sigmoid(A(m.Wf_b) @ xh_b + A(m.bf_b))
    input_b = _np_sigmoid(A(m.Wi_b) @ xh_b + A(m.bi_b))
    output_b = _np_sigmoid(A(m.Wo_b) @ xh_b + A(m.bo_b))
    c_hat_b = np.tanh(A(m.Wcc_b) @ xh_b + A(m.bcc_b))
    next_c_b = forget_b * cprev_b + input_b * c_hat_b
    next_h_b = output_b * np.tanh(next_c_f)        # same quirk as the reference module
    next_h = np.concatenate((next_h_f, next_h_b))
    y = A(m.Wy) @ next_h + A(m.by)
    return (next_h_f, next_c_f, y, forget_f, input_f, output_f, c_hat_f,
            next_h_b, next_c_b, forget_b, input_b, output_b, c_hat_b)


def _np_forward_sequence(m, xs_f, xs_b, h0_f, h0_b, c0_f, c0_b):
    h_f, h_b, c_f, c_b = h0_f, h0_b, c0_f, c0_b
    steps = []
    for t in range(xs_f.shape[0]):
        s = _np_forward_step(m, xs_f[t], xs_b[t], h_f, h_b, c_f, c_b)
        steps.append(s)
        h_f, c_f = s[0], s[1]
        h_b, c_b = s[7], s[8]
    return [np.stack([s[k] for s in steps], axis=0) for k in range(13)]


if __name__ == "__main__":
    hidden_size, vocab_size, seq_len = 32, 16, 8
    key = jax.random.PRNGKey(0)
    k_model, k_xf, k_xb, k_hf, k_hb, k_cf, k_cb = jax.random.split(key, 7)

    model = BiLSTMPallas(hidden_size, vocab_size, k_model)

    xs_f = jax.random.normal(k_xf, (seq_len, vocab_size, 1), jnp.float32)
    xs_b = jax.random.normal(k_xb, (seq_len, vocab_size, 1), jnp.float32)
    hprev_f = jax.random.normal(k_hf, (hidden_size, 1), jnp.float32)
    hprev_b = jax.random.normal(k_hb, (hidden_size, 1), jnp.float32)
    cprev_f = jax.random.normal(k_cf, (hidden_size, 1), jnp.float32)
    cprev_b = jax.random.normal(k_cb, (hidden_size, 1), jnp.float32)

    # fused-sequence kernel: the whole time loop inside a single pallas_call
    outs = model.forward_sequence(xs_f, xs_b, hprev_f, hprev_b, cprev_f, cprev_b)
    outs = jax.block_until_ready(outs)

    # float64 numpy reference running the original module's forward() step by step
    ref = _np_forward_sequence(
        model,
        np.asarray(xs_f, np.float64), np.asarray(xs_b, np.float64),
        np.asarray(hprev_f, np.float64), np.asarray(hprev_b, np.float64),
        np.asarray(cprev_f, np.float64), np.asarray(cprev_b, np.float64))

    for k in range(13):
        np.testing.assert_allclose(np.asarray(outs[k]), ref[k][:, :, 0],
                                   rtol=2e-4, atol=5e-5)

    # single-step API (original module signature / return convention) still works
    step0 = model.forward(xs_f[0], xs_b[0], hprev_f, hprev_b, cprev_f, cprev_b)
    step0 = jax.block_until_ready(step0)
    for k in range(13):
        np.testing.assert_allclose(np.asarray(step0[k]), ref[k][0],
                                   rtol=2e-4, atol=5e-5)

    print("KERNEL_OK")
</pallas_src>

<mosaic_0001>
module attributes {stable_mosaic.version = 11 : i64} {
  func.func @bilstm_seq_kernel(%arg0: i32, %arg1: memref<1x1x256xf32, #tpu.memory_space<vmem>>, %arg2: memref<1x256xf32, #tpu.memory_space<vmem>>, %arg3: memref<1x256xf32, #tpu.memory_space<vmem>>, %arg4: memref<256x1024xf32, #tpu.memory_space<vmem>>, %arg5: memref<256x1024xf32, #tpu.memory_space<vmem>>, %arg6: memref<256x128xf32, #tpu.memory_space<vmem>>, %arg7: memref<1x128xf32, #tpu.memory_space<vmem>>, %arg8: memref<1x16x128xf32, #tpu.memory_space<vmem>>, %arg9: memref<1x256xf32, #tpu.memory_space<vmem>>, %arg10: memref<1x256xf32, #tpu.memory_space<vmem>>) attributes {dimension_semantics = [#tpu.dimension_semantics<arbitrary>], iteration_bounds = array<i64: 8>, scalar_prefetch = 0 : i64, scratch_operands = 2 : i64, tpu.core_type = #tpu.core_type<tc>, window_params = [{transform_indices = @transform_0, window_bounds = array<i64: 1, 1, 256>}, {pipeline_mode = #tpu.pipeline_mode<synchronous>, transform_indices = @transform_1, window_bounds = array<i64: 1, 256>}, {pipeline_mode = #tpu.pipeline_mode<synchronous>, transform_indices = @transform_2, window_bounds = array<i64: 1, 256>}, {pipeline_mode = #tpu.pipeline_mode<synchronous>, transform_indices = @transform_3, window_bounds = array<i64: 256, 1024>}, {pipeline_mode = #tpu.pipeline_mode<synchronous>, transform_indices = @transform_4, window_bounds = array<i64: 256, 1024>}, {pipeline_mode = #tpu.pipeline_mode<synchronous>, transform_indices = @transform_5, window_bounds = array<i64: 256, 128>}, {pipeline_mode = #tpu.pipeline_mode<synchronous>, transform_indices = @transform_6, window_bounds = array<i64: 1, 128>}, {transform_indices = @transform_7, window_bounds = array<i64: 1, 16, 128>}]} {
    %c0_i32 = arith.constant 0 : i32
    %0 = arith.cmpi eq, %arg0, %c0_i32 : i32
    %1 = arith.extui %0 : i1 to i32
    %c0_i32_0 = arith.constant 0 : i32
    %2 = arith.cmpi ne, %1, %c0_i32_0 : i32
    scf.if %2 {
      %c0_58 = arith.constant 0 : index
      %c0_59 = arith.constant 0 : index
      %114 = vector.load %arg2[%c0_58, %c0_59] : memref<1x256xf32, #tpu.memory_space<vmem>>, vector<1x256xf32>
      %c0_60 = arith.constant 0 : index
      %c0_61 = arith.constant 0 : index
      %115 = vector.load %arg9[%c0_60, %c0_61] : memref<1x256xf32, #tpu.memory_space<vmem>>, vector<1x256xf32>
      tpu.vector_store %arg9[%c0_60, %c0_61], %114 {strides = array<i32>} : memref<1x256xf32, #tpu.memory_space<vmem>>, vector<1x256xf32>,
      %c0_62 = arith.constant 0 : index
      %c0_63 = arith.constant 0 : index
      %116 = vector.load %arg3[%c0_62, %c0_63] : memref<1x256xf32, #tpu.memory_space<vmem>>, vector<1x256xf32>
      %c0_64 = arith.constant 0 : index
      %c0_65 = arith.constant 0 : index
      %117 = vector.load %arg10[%c0_64, %c0_65] : memref<1x256xf32, #tpu.memory_space<vmem>>, vector<1x256xf32>
      tpu.vector_store %arg10[%c0_64, %c0_65], %116 {strides = array<i32>} : memref<1x256xf32, #tpu.memory_space<vmem>>, vector<1x256xf32>,
    } else {
    }
    %c0 = arith.constant 0 : index
    %c0_1 = arith.constant 0 : index
    %c0_2 = arith.constant 0 : index
    %3 = vector.load %arg1[%c0, %c0_1, %c0_2] : memref<1x1x256xf32, #tpu.memory_space<vmem>>, vector<1x1x256xf32>
    %4 = vector.shape_cast %3 : vector<1x1x256xf32> to vector<1x256xf32>
    %c0_3 = arith.constant 0 : index
    %c0_4 = arith.constant 0 : index
    %5 = vector.load %arg4[%c0_3, %c0_4] : memref<256x1024xf32, #tpu.memory_space<vmem>>, vector<256x1024xf32>
    %cst = arith.constant dense<0.000000e+00> : vector<1x1024xf32>
    %6 = tpu.matmul %4, %5, %cst {dimension_numbers = #tpu.dot_dimension_numbers<[1], [0], [0], [1], [0, 0, 1, 1], [], []>} : vector<1x256xf32>, vector<256x1024xf32>, vector<1x1024xf32> -> vector<1x1024xf32>
    %c0_5 = arith.constant 0 : index
    %c0_6 = arith.constant 0 : index
    %7 = vector.load %arg9[%c0_5, %c0_6] : memref<1x256xf32, #tpu.memory_space<vmem>>, vector<1x256xf32>
    %c0_7 = arith.constant 0 : index
    %c0_8 = arith.constant 0 : index
    %8 = vector.load %arg5[%c0_7, %c0_8] : memref<256x1024xf32, #tpu.memory_space<vmem>>, vector<256x1024xf32>
    %cst_9 = arith.constant dense<0.000000e+00> : vector<1x1024xf32>
    %9 = tpu.matmul %7, %8, %cst_9 {dimension_numbers = #tpu.dot_dimension_numbers<[1], [0], [0], [1], [0, 0, 1, 1], [], []>} : vector<1x256xf32>, vector<256x1024xf32>, vector<1x1024xf32> -> vector<1x1024xf32>
    %10 = arith.addf %6, %9 : vector<1x1024xf32>
    %11 = vector.extract_strided_slice %10 {offsets = [0, 0], sizes = [1, 128], strides = [1, 1]} : vector<1x1024xf32> to vector<1x128xf32>
    %12 = arith.negf %11 : vector<1x128xf32>
    %13 = math.exp %12 : vector<1x128xf32>
    %cst_10 = arith.constant 1.000000e+00 : f32
    %14 = vector.broadcast %cst_10 : f32 to vector<1x128xf32>
    %15 = arith.addf %14, %13 : vector<1x128xf32>
    %16 = arith.divf %14, %15 : vector<1x128xf32>
    %17 = vector.extract_strided_slice %10 {offsets = [0, 128], sizes = [1, 128], strides = [1, 1]} : vector<1x1024xf32> to vector<1x128xf32>
    %18 = arith.negf %17 : vector<1x128xf32>
    %19 = math.exp %18 : vector<1x128xf32>
    %cst_11 = arith.constant 1.000000e+00 : f32
    %20 = vector.broadcast %cst_11 : f32 to vector<1x128xf32>
    %21 = arith.addf %20, %19 : vector<1x128xf32>
    %22 = arith.divf %20, %21 : vector<1x128xf32>
    %23 = vector.extract_strided_slice %10 {offsets = [0, 256], sizes = [1, 128], strides = [1, 1]} : vector<1x1024xf32> to vector<1x128xf32>
    %24 = arith.negf %23 : vector<1x128xf32>
    %25 = math.exp %24 : vector<1x128xf32>
    %cst_12 = arith.constant 1.000000e+00 : f32
    %26 = vector.broadcast %cst_12 : f32 to vector<1x128xf32>
    %27 = arith.addf %26, %25 : vector<1x128xf32>
    %28 = arith.divf %26, %27 : vector<1x128xf32>
    %29 = vector.extract_strided_slice %10 {offsets = [0, 384], sizes = [1, 128], strides = [1, 1]} : vector<1x1024xf32> to vector<1x128xf32>
    %30 = math.tanh %29 : vector<1x128xf32>
    %31 = vector.extract_strided_slice %10 {offsets = [0, 512], sizes = [1, 128], strides = [1, 1]} : vector<1x1024xf32> to vector<1x128xf32>
    %32 = arith.negf %31 : vector<1x128xf32>
    %33 = math.exp %32 : vector<1x128xf32>
    %cst_13 = arith.constant 1.000000e+00 : f32
    %34 = vector.broadcast %cst_13 : f32 to vector<1x128xf32>
    %35 = arith.addf %34, %33 : vector<1x128xf32>
    %36 = arith.divf %34, %35 : vector<1x128xf32>
    %37 = vector.extract_strided_slice %10 {offsets = [0, 640], sizes = [1, 128], strides = [1, 1]} : vector<1x1024xf32> to vector<1x128xf32>
    %38 = arith.negf %37 : vector<1x128xf32>
    %39 = math.exp %38 : vector<1x128xf32>
    %cst_14 = arith.constant 1.000000e+00 : f32
    %40 = vector.broadcast %cst_14 : f32 to vector<1x128xf32>
    %41 = arith.addf %40, %39 : vector<1x128xf32>
    %42 = arith.divf %40, %41 : vector<1x128xf32>
    %43 = vector.extract_strided_slice %10 {offsets = [0, 768], sizes = [1, 128], strides = [1, 1]} : vector<1x1024xf32> to vector<1x128xf32>
    %44 = arith.negf %43 : vector<1x128xf32>
    %45 = math.exp %44 : vector<1x128xf32>
    %cst_15 = arith.constant 1.000000e+00 : f32
    %46 = vector.broadcast %cst_15 : f32 to vector<1x128xf32>
    %47 = arith.addf %46, %45 : vector<1x128xf32>
    %48 = arith.divf %46, %47 : vector<1x128xf32>
    %49 = vector.extract_strided_slice %10 {offsets = [0, 896], sizes = [1, 128], strides = [1, 1]} : vector<1x1024xf32> to vector<1x128xf32>
    %50 = math.tanh %49 : vector<1x128xf32>
    %c0_16 = arith.constant 0 : index
    %c0_17 = arith.constant 0 : index
    %51 = vector.load %arg10[%c0_16, %c0_17] : memref<1x256xf32, #tpu.memory_space<vmem>>, vector<1x128xf32>
    %c0_18 = arith.constant 0 : index
    %c128 = arith.constant 128 : index
    %52 = vector.load %arg10[%c0_18, %c128] : memref<1x256xf32, #tpu.memory_space<vmem>>, vector<1x128xf32>
    %53 = arith.mulf %16, %51 : vector<1x128xf32>
    %54 = arith.mulf %22, %30 : vector<1x128xf32>
    %55 = arith.addf %53, %54 : vector<1x128xf32>
    %56 = math.tanh %55 : vector<1x128xf32>
    %57 = arith.mulf %28, %56 : vector<1x128xf32>
    %58 = arith.mulf %36, %52 : vector<1x128xf32>
    %59 = arith.mulf %42, %50 : vector<1x128xf32>
    %60 = arith.addf %58, %59 : vector<1x128xf32>
    %61 = math.tanh %55 : vector<1x128xf32>
    %62 = arith.mulf %48, %61 : vector<1x128xf32>
    %63 = tpu.concatenate %55, %60 in 1 : vector<1x128xf32>, vector<1x128xf32> -> vector<1x256xf32>
    %c0_19 = arith.constant 0 : index
    %c0_20 = arith.constant 0 : index
    %64 = vector.load %arg10[%c0_19, %c0_20] : memref<1x256xf32, #tpu.memory_space<vmem>>, vector<1x256xf32>
    tpu.vector_store %arg10[%c0_19, %c0_20], %63 {strides = array<i32>} : memref<1x256xf32, #tpu.memory_space<vmem>>, vector<1x256xf32>,
    %65 = tpu.concatenate %57, %62 in 1 : vector<1x128xf32>, vector<1x128xf32> -> vector<1x256xf32>
    %c0_21 = arith.constant 0 : index
    %c0_22 = arith.constant 0 : index
    %66 = vector.load %arg9[%c0_21, %c0_22] : memref<1x256xf32, #tpu.memory_space<vmem>>, vector<1x256xf32>
    tpu.vector_store %arg9[%c0_21, %c0_22], %65 {strides = array<i32>} : memref<1x256xf32, #tpu.memory_space<vmem>>, vector<1x256xf32>,
    %c0_23 = arith.constant 0 : index
    %c0_24 = arith.constant 0 : index
    %67 = vector.load %arg6[%c0_23, %c0_24] : memref<256x128xf32, #tpu.memory_space<vmem>>, vector<256x128xf32>
    %cst_25 = arith.constant dense<0.000000e+00> : vector<1x128xf32>
    %68 = tpu.matmul %65, %67, %cst_25 {dimension_numbers = #tpu.dot_dimension_numbers<[1], [0], [0], [1], [0, 0, 1, 1], [], []>} : vector<1x256xf32>, vector<256x128xf32>, vector<1x128xf32> -> vector<1x128xf32>
    %c0_26 = arith.constant 0 : index
    %c0_27 = arith.constant 0 : index
    %69 = vector.load %arg7[%c0_26, %c0_27] : memref<1x128xf32, #tpu.memory_space<vmem>>, vector<1x128xf32>
    %70 = arith.addf %68, %69 : vector<1x128xf32>
    %c0_28 = arith.constant 0 : index
    %c0_29 = arith.constant 0 : index
    %c0_30 = arith.constant 0 : index
    %71 = vector.load %arg8[%c0_28, %c0_29, %c0_30] : memref<1x16x128xf32, #tpu.memory_space<vmem>>, vector<1x1x128xf32>
    %72 = vector.shape_cast %71 : vector<1x1x128xf32> to vector<1x128xf32>
    %73 = vector.shape_cast %57 : vector<1x128xf32> to vector<1x1x128xf32>
    tpu.vector_store %arg8[%c0_28, %c0_29, %c0_30], %73 {strides = array<i32>} : memref<1x16x128xf32, #tpu.memory_space<vmem>>, vector<1x1x128xf32>,
    %c0_31 = arith.constant 0 : index
    %c1 = arith.constant 1 : index
    %c0_32 = arith.constant 0 : index
    %74 = vector.load %arg8[%c0_31, %c1, %c0_32] : memref<1x16x128xf32, #tpu.memory_space<vmem>>, vector<1x1x128xf32>
    %75 = vector.shape_cast %74 : vector<1x1x128xf32> to vector<1x128xf32>
    %76 = vector.shape_cast %55 : vector<1x128xf32> to vector<1x1x128xf32>
    tpu.vector_store %arg8[%c0_31, %c1, %c0_32], %76 {strides = array<i32>} : memref<1x16x128xf32, #tpu.memory_space<vmem>>, vector<1x1x128xf32>,
    %c0_33 = arith.constant 0 : index
    %c2 = arith.constant 2 : index
    %c0_34 = arith.constant 0 : index
    %77 = vector.load %arg8[%c0_33, %c2, %c0_34] : memref<1x16x128xf32, #tpu.memory_space<vmem>>, vector<1x1x128xf32>
    %78 = vector.shape_cast %77 : vector<1x1x128xf32> to vector<1x128xf32>
    %79 = vector.shape_cast %70 : vector<1x128xf32> to vector<1x1x128xf32>
    tpu.vector_store %arg8[%c0_33, %c2, %c0_34], %79 {strides = array<i32>} : memref<1x16x128xf32, #tpu.memory_space<vmem>>, vector<1x1x128xf32>,
    %c0_35 = arith.constant 0 : index
    %c3 = arith.constant 3 : index
    %c0_36 = arith.constant 0 : index
    %80 = vector.load %arg8[%c0_35, %c3, %c0_36] : memref<1x16x128xf32, #tpu.memory_space<vmem>>, vector<1x1x128xf32>
    %81 = vector.shape_cast %80 : vector<1x1x128xf32> to vector<1x128xf32>
    %82 = vector.shape_cast %16 : vector<1x128xf32> to vector<1x1x128xf32>
    tpu.vector_store %arg8[%c0_35, %c3, %c0_36], %82 {strides = array<i32>} : memref<1x16x128xf32, #tpu.memory_space<vmem>>, vector<1x1x128xf32>,
    %c0_37 = arith.constant 0 : index
    %c4 = arith.constant 4 : index
    %c0_38 = arith.constant 0 : index
    %83 = vector.load %arg8[%c0_37, %c4, %c0_38] : memref<1x16x128xf32, #tpu.memory_space<vmem>>, vector<1x1x128xf32>
    %84 = vector.shape_cast %83 : vector<1x1x128xf32> to vector<1x128xf32>
    %85 = vector.shape_cast %22 : vector<1x128xf32> to vector<1x1x128xf32>
    tpu.vector_store %arg8[%c0_37, %c4, %c0_38], %85 {strides = array<i32>} : memref<1x16x128xf32, #tpu.memory_space<vmem>>, vector<1x1x128xf32>,
    %c0_39 = arith.constant 0 : index
    %c5 = arith.constant 5 : index
    %c0_40 = arith.constant 0 : index
    %86 = vector.load %arg8[%c0_39, %c5, %c0_40] : memref<1x16x128xf32, #tpu.memory_space<vmem>>, vector<1x1x128xf32>
    %87 = vector.shape_cast %86 : vector<1x1x128xf32> to vector<1x128xf32>
    %88 = vector.shape_cast %28 : vector<1x128xf32> to vector<1x1x128xf32>
    tpu.vector_store %arg8[%c0_39, %c5, %c0_40], %88 {strides = array<i32>} : memref<1x16x128xf32, #tpu.memory_space<vmem>>, vector<1x1x128xf32>,
    %c0_41 = arith.constant 0 : index
    %c6 = arith.constant 6 : index
    %c0_42 = arith.constant 0 : index
    %89 = vector.load %arg8[%c0_41, %c6, %c0_42] : memref<1x16x128xf32, #tpu.memory_space<vmem>>, vector<1x1x128xf32>
    %90 = vector.shape_cast %89 : vector<1x1x128xf32> to vector<1x128xf32>
    %91 = vector.shape_cast %30 : vector<1x128xf32> to vector<1x1x128xf32>
    tpu.vector_store %arg8[%c0_41, %c6, %c0_42], %91 {strides = array<i32>} : memref<1x16x128xf32, #tpu.memory_space<vmem>>, vector<1x1x128xf32>,
    %c0_43 = arith.constant 0 : index
    %c7 = arith.constant 7 : index
    %c0_44 = arith.constant 0 : index
    %92 = vector.load %arg8[%c0_43, %c7, %c0_44] : memref<1x16x128xf32, #tpu.memory_space<vmem>>, vector<1x1x128xf32>
    %93 = vector.shape_cast %92 : vector<1x1x128xf32> to vector<1x128xf32>
    %94 = vector.shape_cast %62 : vector<1x128xf32> to vector<1x1x128xf32>
    tpu.vector_store %arg8[%c0_43, %c7, %c0_44], %94 {strides = array<i32>} : memref<1x16x128xf32, #tpu.memory_space<vmem>>, vector<1x1x128xf32>,
    %c0_45 = arith.constant 0 : index
    %c8 = arith.constant 8 : index
    %c0_46 = arith.constant 0 : index
    %95 = vector.load %arg8[%c0_45, %c8, %c0_46] : memref<1x16x128xf32, #tpu.memory_space<vmem>>, vector<1x1x128xf32>
    %96 = vector.shape_cast %95 : vector<1x1x128xf32> to vector<1x128xf32>
    %97 = vector.shape_cast %60 : vector<1x128xf32> to vector<1x1x128xf32>
    tpu.vector_store %arg8[%c0_45, %c8, %c0_46], %97 {strides = array<i32>} : memref<1x16x128xf32, #tpu.memory_space<vmem>>, vector<1x1x128xf32>,
    %c0_47 = arith.constant 0 : index
    %c9 = arith.constant 9 : index
    %c0_48 = arith.constant 0 : index
    %98 = vector.load %arg8[%c0_47, %c9, %c0_48] : memref<1x16x128xf32, #tpu.memory_space<vmem>>, vector<1x1x128xf32>
    %99 = vector.shape_cast %98 : vector<1x1x128xf32> to vector<1x128xf32>
    %100 = vector.shape_cast %36 : vector<1x128xf32> to vector<1x1x128xf32>
    tpu.vector_store %arg8[%c0_47, %c9, %c0_48], %100 {strides = array<i32>} : memref<1x16x128xf32, #tpu.memory_space<vmem>>, vector<1x1x128xf32>,
    %c0_49 = arith.constant 0 : index
    %c10 = arith.constant 10 : index
    %c0_50 = arith.constant 0 : index
    %101 = vector.load %arg8[%c0_49, %c10, %c0_50] : memref<1x16x128xf32, #tpu.memory_space<vmem>>, vector<1x1x128xf32>
    %102 = vector.shape_cast %101 : vector<1x1x128xf32> to vector<1x128xf32>
    %103 = vector.shape_cast %42 : vector<1x128xf32> to vector<1x1x128xf32>
    tpu.vector_store %arg8[%c0_49, %c10, %c0_50], %103 {strides = array<i32>} : memref<1x16x128xf32, #tpu.memory_space<vmem>>, vector<1x1x128xf32>,
    %c0_51 = arith.constant 0 : index
    %c11 = arith.constant 11 : index
    %c0_52 = arith.constant 0 : index
    %104 = vector.load %arg8[%c0_51, %c11, %c0_52] : memref<1x16x128xf32, #tpu.memory_space<vmem>>, vector<1x1x128xf32>
    %105 = vector.shape_cast %104 : vector<1x1x128xf32> to vector<1x128xf32>
    %106 = vector.shape_cast %48 : vector<1x128xf32> to vector<1x1x128xf32>
    tpu.vector_store %arg8[%c0_51, %c11, %c0_52], %106 {strides = array<i32>} : memref<1x16x128xf32, #tpu.memory_space<vmem>>, vector<1x1x128xf32>,
    %c0_53 = arith.constant 0 : index
    %c12 = arith.constant 12 : index
    %c0_54 = arith.constant 0 : index
    %107 = vector.load %arg8[%c0_53, %c12, %c0_54] : memref<1x16x128xf32, #tpu.memory_space<vmem>>, vector<1x1x128xf32>
    %108 = vector.shape_cast %107 : vector<1x1x128xf32> to vector<1x128xf32>
    %109 = vector.shape_cast %50 : vector<1x128xf32> to vector<1x1x128xf32>
    tpu.vector_store %arg8[%c0_53, %c12, %c0_54], %109 {strides = array<i32>} : memref<1x16x128xf32, #tpu.memory_space<vmem>>, vector<1x1x128xf32>,
    %cst_55 = arith.constant 0.000000e+00 : f32
    %110 = vector.broadcast %cst_55 : f32 to vector<3x128xf32>
    %c0_56 = arith.constant 0 : index
    %c13 = arith.constant 13 : index
    %c0_57 = arith.constant 0 : index
    %111 = vector.load %arg8[%c0_56, %c13, %c0_57] : memref<1x16x128xf32, #tpu.memory_space<vmem>>, vector<1x3x128xf32>
    %112 = vector.shape_cast %111 : vector<1x3x128xf32> to vector<3x128xf32>
    %113 = vector.shape_cast %110 : vector<3x128xf32> to vector<1x3x128xf32>
    tpu.vector_store %arg8[%c0_56, %c13, %c0_57], %113 {strides = array<i32>} : memref<1x16x128xf32, #tpu.memory_space<vmem>>, vector<1x3x128xf32>,
    return
  }
  func.func @transform_0(%arg0: i32) -> (i32, i32, i32) {
    %c0_i32 = arith.constant 0 : i32
    %c0_i32_0 = arith.constant 0 : i32
    %c0_i32_1 = arith.constant 0 : i32
    return %arg0, %c0_i32, %c0_i32_0 : i32, i32, i32
  }
  func.func @transform_1(%arg0: i32) -> (i32, i32) {
    %c0_i32 = arith.constant 0 : i32
    %c0_i32_0 = arith.constant 0 : i32
    %c0_i32_1 = arith.constant 0 : i32
    return %c0_i32, %c0_i32_0 : i32, i32
  }
  func.func @transform_2(%arg0: i32) -> (i32, i32) {
    %c0_i32 = arith.constant 0 : i32
    %c0_i32_0 = arith.constant 0 : i32
    %c0_i32_1 = arith.constant 0 : i32
    return %c0_i32, %c0_i32_0 : i32, i32
  }
  func.func @transform_3(%arg0: i32) -> (i32, i32) {
    %c0_i32 = arith.constant 0 : i32
    %c0_i32_0 = arith.constant 0 : i32
    %c0_i32_1 = arith.constant 0 : i32
    return %c0_i32, %c0_i32_0 : i32, i32
  }
  func.func @transform_4(%arg0: i32) -> (i32, i32) {
    %c0_i32 = arith.constant 0 : i32
    %c0_i32_0 = arith.constant 0 : i32
    %c0_i32_1 = arith.constant 0 : i32
    return %c0_i32, %c0_i32_0 : i32, i32
  }
  func.func @transform_5(%arg0: i32) -> (i32, i32) {
    %c0_i32 = arith.constant 0 : i32
    %c0_i32_0 = arith.constant 0 : i32
    %c0_i32_1 = arith.constant 0 : i32
    return %c0_i32, %c0_i32_0 : i32, i32
  }
  func.func @transform_6(%arg0: i32) -> (i32, i32) {
    %c0_i32 = arith.constant 0 : i32
    %c0_i32_0 = arith.constant 0 : i32
    %c0_i32_1 = arith.constant 0 : i32
    return %c0_i32, %c0_i32_0 : i32, i32
  }
  func.func @transform_7(%arg0: i32) -> (i32, i32, i32) {
    %c0_i32 = arith.constant 0 : i32
    %c0_i32_0 = arith.constant 0 : i32
    %c0_i32_1 = arith.constant 0 : i32
    return %arg0, %c0_i32, %c0_i32_0 : i32, i32, i32
  }
}

</mosaic_0001>

<bundles_post_ra>
// kernel: tpu_custom_call.1
= control target key start
LH: loop header
LB: loop body
LE: loop exit
PB: predicated region body
PF: predicated region fallthrough
CT: control target
= control target key end

     0   :  { %s2691_s0 = inlined_call_operand.hbm [shape: f32[8,1,256], index: 0, kind: input, shape index: {}]   ;;  %s2692_s1 = inlined_call_operand.hbm [shape: f32[1,256], index: 1, kind: input, shape index: {}]   ;;  %s2693_s2 = inlined_call_operand.hbm [shape: f32[1,256], index: 2, kind: input, shape index: {}]   ;;  %s2694_s3 = inlined_call_operand.hbm [shape: f32[256,1024], index: 3, kind: input, shape index: {}]   ;;  %s2695_s4 = inlined_call_operand.hbm [shape: f32[256,1024], index: 4, kind: input, shape index: {}]   ;;  %s2696_s5 = inlined_call_operand.hbm [shape: f32[256,128], index: 5, kind: input, shape index: {}]   ;;  %s2697_s6 = inlined_call_operand.vmem [shape: f32[1,128], index: 6, kind: input, shape index: {}]   ;;  %s2698_s7 = inlined_call_operand.hbm [shape: f32[8,16,128], index: 7, kind: output, shape index: {}]  }
   0x1   :  { %2699 = sst [smem:[#allocation21_spill]] %s2692_s1 }
   0x2   :  { %12 = vsyncpa [#allocation5], 0 }
   0x3   :  { %14 = vsyncpa [#allocation5 + $0x1], 0 }
   0x4   :  { %15 = vsyncpa [#allocation8], 0 }
   0x5   :  { %16 = vsyncpa [#allocation11], 0 }
   0x6   :  { %17 = vsyncpa [#allocation14], 0 }
   0x7   :  { %18 = vsyncpa [#allocation6], 0 }
   0x8   :  { %20 = vsyncpa [#allocation6 + $0x1], 0  ;;  %s2396_s24 = smov 0   ;;  %s2398_s25 = smov 0  }
   0x9   :  { %s2400_s26 = smov 0   ;;  %s2402_s27 = smov 0  }
   0xa LB: > { %s2700_s1 = sld [smem:[#allocation21_spill]]  ;;  %s2420_s8 = sadd.s32 4294967295, %s2342_s27   ;;  %s2342_s27 = sphi %s2402_s27, %s2713_s27   ;;  %s2338_s26 = sphi %s2400_s26, %s2712_s26   ;;  %s2334_s25 = sphi %s2398_s25, %s2711_s25   ;;  %s2330_s24 = sphi %s2396_s24, %s2710_s24  }
   0xb   : > { %p1920_p0 = scmp.ge.s32.totalorder %s2342_s27, 1  ;;  %p47_p1 = scmp.eq.s32.totalorder %s2420_s8, 0 }
   0xc   : > { %p209_p2 = scmp.lt.s32.totalorder %s2342_s27, 9  ;;  %s2344_s10 = smov [#allocation7]  }
   0xd   : > { %s223_s11 = sshll.u32 %s2344_s10, 4  ;;  %s244_s14 = sshll.u32 %s2694_s3, 4  ;;  %s224_s11 = int_to_ptr.vmem [resolvable:$true] %s223_s11  ;;  %s245_s14 = int_to_ptr.hbm [resolvable:$true] %s244_s14 }
   0xe   : > { %p2426_p4 = pnand %p1920_p0, %p209_p2  ;;  %s2345_s16 = smov [#allocation10]  }
   0xf   : > { %s246_s17 = sshll.u32 %s2345_s16, 4  ;;  %s2346_s18 = smov 1024   ;;  %s247_s17 = int_to_ptr.vmem [resolvable:$true] %s246_s17 }
  0x10   : > { %s221_s30 = sshll.u32 %s2700_s1, 4  ;;  %p1974_p5 = pneg %p2426_p4  ;;  %s222_s30 = int_to_ptr.hbm [resolvable:$true] %s221_s30 }
  0x11   : > { %s2347_s19 = smov 64   ;;  %s233_s22 = sshll.u32 %s2693_s2, 4  ;;  %s234_s22 = int_to_ptr.hbm [resolvable:$true] %s233_s22 }
  0x12   : > { %p2437_p6 = pnand %p1974_p5, %p47_p1  ;;  %s2348_s23 = smov [#allocation9]  }
  0x13   : > { %s235_s28 = sshll.u32 %s2348_s23, 4  ;;  %s258_s12 = sshll.u32 %s2695_s4, 4  ;;  %s236_s28 = int_to_ptr.vmem [resolvable:$true] %s235_s28  ;;  %s259_s12 = int_to_ptr.hbm [resolvable:$true] %s258_s12 }
  0x14   : > { %1977 = dma.hbm_to_vmem [thread:$0]  (!%p2437_p6), %s222_s30, 32, %s224_s11, [#allocation8]  }
  0x15   : > { %1983 = dma.hbm_to_vmem [thread:$0]  (!%p2437_p6), %s245_s14, 32768, %s247_s17, [#allocation11], %s2346_s18, %s2346_s18, %s2347_s19  }
  0x16   : > { %1980 = dma.hbm_to_vmem [thread:$0]  (!%p2437_p6), %s234_s22, 32, %s236_s28, [#allocation8]  }
  0x17   : > { %s2349_s30 = smov [#allocation12]   ;;  %s272_s16 = sshll.u32 %s2696_s5, 4  ;;  %s273_s16 = int_to_ptr.hbm [resolvable:$true] %s272_s16 }
  0x18   : > { %s260_s11 = sshll.u32 %s2349_s30, 4  ;;  %s2350_s17 = smov [#allocation13]   ;;  %s261_s11 = int_to_ptr.vmem [resolvable:$true] %s260_s11 }
  0x19   : > { %1986 = dma.hbm_to_vmem [thread:$0]  (!%p2437_p6), %s259_s12, 32768, %s261_s11, [#allocation11], %s2346_s18, %s2346_s18, %s2347_s19  }
  0x1a   : > { %s274_s20 = sshll.u32 %s2350_s17, 4  ;;  %s2351_s21 = smov 128   ;;  %s275_s20 = int_to_ptr.vmem [resolvable:$true] %s274_s20 }
  0x1b   : > { %s2352_s22 = smov 8   ;;  %s1919_s23 = sadd.s32 4294967294, %s2342_s27  }
  0x1c   : > { %1989 = dma.hbm_to_vmem [thread:$0]  (!%p2437_p6), %s273_s16, 4096, %s275_s20, [#allocation14], %s2351_s21, %s2351_s21, %s2352_s22  }
  0x1d   : > { %s2462_s28 = sadd.s32 1, %s2342_s27   ;;  %s33_s29 = sadd.s32 1, %s2338_s26 }
  0x1e   : > { %s30_s10 = ssub.s32 %s2342_s27, %s2462_s28  ;;  %p40_p7 = scmp.ne.s32.totalorder %s2338_s26, %s2334_s25 }
  0x1f   : > { %p31_p8 = scmp.eq.s32.totalorder %s30_s10, 0  ;;  %p41_p9 = scmp.eq.s32.totalorder %s2342_s27, 0 }
  0x20   : > { %p46_p10 = scmp.ne.s32.totalorder %s2334_s25, %s2330_s24  ;;  %p196_p11 = scmp.eq.s32.totalorder %s2420_s8, 7 }
  0x21   : > { %s2474_s18 = scalar_select %p31_p8, %s2338_s26, %s33_s29  }
  0x22   : > { %p2478_p12 = por %p47_p1, %p46_p10  ;;  %p2482_p13 = por %p196_p11, %p40_p7 }
  0x23   : > { %p202_p0 = scmp.eq.s32.totalorder %s1919_s23, 7  ;;  %p42_p2 = por %p41_p9, %p40_p7 }
  0x24   : > { %s291_s12 = sand.u32 1, %s2338_s26   ;;  %p2003_p6 = scmp.lt.s32.totalorder %s2342_s27, 8 }
  0x25   : > { %p2487_p5 = por %p202_p0, %p46_p10  ;;  %s1927_s11 = sshll.u32 %s291_s12, 1 }
  0x26   : > { %s1928_s13 = sshll.u32 %s2342_s27, 1  ;;  %s295_s21 = scalar_lea.vmem [#allocation4], %s1927_s11 }
  0x27   : > { %s299_s17 = scalar_lea.hbm %s2691_s0, %s1928_s13  ;;  %s303_s22 = sshll.u32 %s295_s21, 4  ;;  %s304_s22 = int_to_ptr.vmem [resolvable:$true] %s303_s22 }
  0x28   : > { %s301_s20 = sshll.u32 %s299_s17, 4  ;;  %p2496_p8 = pnand %p2003_p6, %p42_p2  ;;  %s302_s20 = int_to_ptr.hbm [resolvable:$true] %s301_s20 }
  0x29   : > { %s292_s29 = scalar_lea.sflag [#allocation5], %s291_s12  ;;  %s2234_s10 = sshra.s32 %s302_s20, 4  ;;  %s2235_s10 = int_to_ptr.hbm [resolvable:$true] %s2234_s10 }
  0x2a   : > { %s2236_s1 = scalar_lea.hbm %s2235_s10, 2  ;;  %p2238_p9 = pneg %p2496_p8 }
  0x2b   : > { %p2237_p7 = scmp.ne.s32.totalorder %s2235_s10, %s2236_s1  ;;  %s2241_s11 = scalar_lea.hbm %s2691_s0, 16 }
  0x2c   : > { %p2242_p0 = scmp.lt.s32.totalorder %s2235_s10, %s2691_s0  ;;  %p2243_p2 = scmp.lt.s32.totalorder %s2241_s11, %s2236_s1 }
  0x2d   : > { %p2239_p10 = pnand %p2238_p9, %p2237_p7 }
  0x2e   : > { %p2244_p6 = por %p2243_p2, %p2242_p0 }
  0x2f   : > { %p2240_p11 = pneg %p2239_p10 }
  0x31   : > { %p2245_p3 = pnand %p2244_p6, %p2240_p11 }
  0x33   : > { %2248 = shalt.err (!%p2245_p3)
}
  0x34   : > { %1993 = dma.hbm_to_vmem [thread:$0]  (!%p2496_p8), %s302_s20, 32, %s304_s22, %s292_s29  }
  0x35   : > { %312 = sbr.rel (%p2426_p4) target bundleno = 640 (0x280), region = 48  ;;  %s2513_s12 = sand.u32 (!%p2426_p4), 1, %s2334_s25  }
  0x36   : > { %s1930_s21 = sshll.u32 (!%p2426_p4), %s2513_s12, 1  ;;  %s315_s13 = scalar_lea.sflag (!%p2426_p4), [#allocation5], %s2513_s12 }
  0x37   : > { %s2517_s14 = scalar_lea.vmem (!%p2426_p4), [#allocation4], %s1930_s21 }
  0x3a   : > { %2309 = dma.done.wait (%p2478_p12), %s315_s13, 32  }
  0x3b   : > { %2311 = vsyncadd (%p2478_p12), %s315_s13, 4294967264 }
  0x3c   : > { %2313 = dma.done.wait (%p47_p1), [#allocation8], 64  }
  0x3d   : > { %2315 = vsyncadd (%p47_p1), [#allocation8], 4294967232 }
  0x3e   : > { %2317 = dma.done.wait (%p47_p1), [#allocation11], 65536  }
  0x3f   : > { %2319 = vsyncadd (%p47_p1), [#allocation11], 4294901760 }
  0x40   : > { %2321 = dma.done.wait (%p47_p1), [#allocation14], 4096  }
  0x41   : > { %2323 = vsyncadd (%p47_p1), [#allocation14], 4294963200  ;;  %s1936_s1 = sshll.u32 %s2513_s12, 4  ;;  %p2707_p3 = scmp.ne.s32.totalorder %s2420_s8, 0 }
  0x42   : > { %s2536_s9 = scalar_lea.vmem [#allocation15], %s1936_s1 }
  0x43   : > { %378 = sbr.rel (%p2707_p3) target bundleno = 77 (0x4d), region = 76 }
  0x48   : > { %v379_v0 = vld [vmem:[#allocation7] sm:$0x3]  ;;  %v380_v1 = vlaneseq  ;;  %v385_v2 = vld [vmem:[#allocation9] sm:$0x3] }
  0x4a   : > { %vm382_vm0 = vcmp.lt.s32.totalorder %v380_v1, 256 }
  0x4b   : > { %384 = vst.msk [vmem:[#allocation2] sm:$0x3] %vm382_vm0, %v379_v0 }
  0x4c   : > { %386 = vst.msk [vmem:[#allocation3] sm:$0x3] %vm382_vm0, %v385_v2 }
  0x4d PF: > { %v765_v3 = vld [vmem:[#allocation12 + $0x3c0] sm:$0xff]  ;;  %v766_v4 = vld [vmem:[#allocation12 + $0x3c8] sm:$0xff]  ;;  %v767_v1 = vld [vmem:[#allocation12 + $0x3d0] sm:$0xff]  ;;  %s1949_s15 = sshll.u32 %s2420_s8, 4  ;;  %s1795_s11 = sshll.u32 %s2536_s9, 4  ;;  %s1796_s11 = int_to_ptr.vmem [resolvable:$true] %s1795_s11 }
  0x4e   : > { %v757_v5 = vld [vmem:[#allocation12 + $0x380] sm:$0xff]  ;;  %906 = vmatpush.msra.mxu0 %v765_v3  ;;  %946 = vmatpush.msra.mxu2 %v766_v4  ;;  %v758_v7 = vld [vmem:[#allocation12 + $0x388] sm:$0xff]  ;;  %v768_v2 = vld [vmem:[#allocation12 + $0x3d8] sm:$0xff]  ;;  %s1794_s23 = scalar_lea.hbm %s2698_s7, %s1949_s15  ;;  %s1783_s17 = scalar_lea.sflag [#allocation6], %s2513_s12 }
  0x4f   : > { %v893_v6 = vld [vmem:[#allocation12 + $0x7c0] sm:$0xff]  ;;  %v894_v8 = vld [vmem:[#allocation12 + $0x7c8] sm:$0xff]  ;;  %s1797_s16 = sshll.u32 %s1794_s23, 4  ;;  %s2284_s1 = scalar_lea.hbm %s2698_s7, 128  ;;  %s1798_s16 = int_to_ptr.hbm [resolvable:$true] %s1797_s16 }
  0x50   : > { %926 = vmatpush.msra.mxu1 %v893_v6  ;;  %966 = vmatpush.msra.mxu3 %v894_v8  ;;  %v749_v9 = vld [vmem:[#allocation12 + $0x340] sm:$0xff]  ;;  %v750_v11 = vld [vmem:[#allocation12 + $0x348] sm:$0xff]  ;;  %v895_v6 = vld [vmem:[#allocation12 + $0x7d0] sm:$0xff]  ;;  %s2278_s8 = sshra.s32 %s1798_s16, 4  ;;  %s2279_s8 = int_to_ptr.hbm [resolvable:$true] %s2278_s8 }
  0x51   : > { %v885_v10 = vld [vmem:[#allocation12 + $0x780] sm:$0xff]  ;;  %907 = vmatpush.msra.mxu0 %v757_v5  ;;  %947 = vmatpush.msra.mxu2 %v758_v7  ;;  %v886_v12 = vld [vmem:[#allocation12 + $0x788] sm:$0xff]  ;;  %v759_v5 = vld [vmem:[#allocation12 + $0x390] sm:$0xff]  ;;  %s2280_s21 = scalar_lea.hbm %s2279_s8, 16  ;;  %p2285_p8 = scmp.lt.s32.totalorder %s2279_s8, %s2698_s7 }
  0x52   : > { %v877_v13 = vld [vmem:[#allocation12 + $0x740] sm:$0xff]  ;;  %927 = vmatpush.msra.mxu1 %v885_v10  ;;  %967 = vmatpush.msra.mxu3 %v886_v12  ;;  %v742_v15 = vld [vmem:[#allocation12 + $0x308] sm:$0xff]  ;;  %v760_v7 = vld [vmem:[#allocation12 + $0x398] sm:$0xff]  ;;  %p2281_p1 = scmp.ne.s32.totalorder %s2279_s8, %s2280_s21  ;;  %p2286_p7 = scmp.lt.s32.totalorder %s2284_s1, %s2280_s21 }
  0x53   : > { %v741_v14 = vld [vmem:[#allocation12 + $0x300] sm:$0xff]  ;;  %v878_v16 = vld [vmem:[#allocation12 + $0x748] sm:$0xff]  ;;  %908 = vmatpush.msra.mxu0 %v749_v9  ;;  %948 = vmatpush.msra.mxu2 %v750_v11  ;;  %v896_v8 = vld [vmem:[#allocation12 + $0x7d8] sm:$0xff] }
  0x54   : > { %v869_v17 = vld [vmem:[#allocation12 + $0x700] sm:$0xff]  ;;  %v870_v18 = vld [vmem:[#allocation12 + $0x708] sm:$0xff]  ;;  %928 = vmatpush.msra.mxu1 %v877_v13  ;;  %968 = vmatpush.msra.mxu3 %v878_v16  ;;  %v751_v9 = vld [vmem:[#allocation12 + $0x350] sm:$0xff]  ;;  %p2282_p4 = pnand %p2281_p1, %p2482_p13  ;;  %p2287_p9 = por %p2286_p7, %p2285_p8 }
  0x55   : > { %v733_v19 = vld [vmem:[#allocation12 + $0x2c0] sm:$0xff]  ;;  %v734_v20 = vld [vmem:[#allocation12 + $0x2c8] sm:$0xff]  ;;  %909 = vmatpush.msra.mxu0 %v741_v14  ;;  %949 = vmatpush.msra.mxu2 %v742_v15  ;;  %v887_v10 = vld [vmem:[#allocation12 + $0x790] sm:$0xff] }
  0x56   : > { %v861_v21 = vld [vmem:[#allocation12 + $0x6c0] sm:$0xff]  ;;  %v862_v22 = vld [vmem:[#allocation12 + $0x6c8] sm:$0xff]  ;;  %929 = vmatpush.msra.mxu1 %v869_v17  ;;  %969 = vmatpush.msra.mxu3 %v870_v18  ;;  %v752_v11 = vld [vmem:[#allocation12 + $0x358] sm:$0xff]  ;;  %p2283_p12 = pneg %p2282_p4 }
  0x57   : > { %v725_v23 = vld [vmem:[#allocation12 + $0x280] sm:$0xff]  ;;  %v726_v24 = vld [vmem:[#allocation12 + $0x288] sm:$0xff]  ;;  %910 = vmatpush.msra.mxu0 %v733_v19  ;;  %950 = vmatpush.msra.mxu2 %v734_v20  ;;  %v888_v12 = vld [vmem:[#allocation12 + $0x798] sm:$0xff] }
  0x58   : > { %v853_v25 = vld [vmem:[#allocation12 + $0x680] sm:$0xff]  ;;  %v854_v26 = vld [vmem:[#allocation12 + $0x688] sm:$0xff]  ;;  %930 = vmatpush.msra.mxu1 %v861_v21  ;;  %970 = vmatpush.msra.mxu3 %v862_v22  ;;  %v743_v13 = vld [vmem:[#allocation12 + $0x310] sm:$0xff]  ;;  %p2288_p10 = pnand %p2287_p9, %p2283_p12 }
  0x59   : > { %v717_v27 = vld [vmem:[#allocation12 + $0x240] sm:$0xff]  ;;  %v718_v28 = vld [vmem:[#allocation12 + $0x248] sm:$0xff]  ;;  %911 = vmatpush.msra.mxu0 %v725_v23  ;;  %951 = vmatpush.msra.mxu2 %v726_v24  ;;  %v879_v14 = vld [vmem:[#allocation12 + $0x750] sm:$0xff] }
  0x5a   : > { %v845_v29 = vld [vmem:[#allocation12 + $0x640] sm:$0xff]  ;;  %v846_v30 = vld [vmem:[#allocation12 + $0x648] sm:$0xff]  ;;  %931 = vmatpush.msra.mxu1 %v853_v25  ;;  %971 = vmatpush.msra.mxu3 %v854_v26  ;;  %v744_v15 = vld [vmem:[#allocation12 + $0x318] sm:$0xff] }
  0x5b   : > { %v709_v31 = vld [vmem:[#allocation12 + $0x200] sm:$0xff]  ;;  %v710_v32 = vld [vmem:[#allocation12 + $0x208] sm:$0xff]  ;;  %912 = vmatpush.msra.mxu0 %v717_v27  ;;  %952 = vmatpush.msra.mxu2 %v718_v28  ;;  %v880_v16 = vld [vmem:[#allocation12 + $0x758] sm:$0xff] }
  0x5c   : > { %v837_v33 = vld [vmem:[#allocation12 + $0x600] sm:$0xff]  ;;  %v838_v34 = vld [vmem:[#allocation12 + $0x608] sm:$0xff]  ;;  %932 = vmatpush.msra.mxu1 %v845_v29  ;;  %972 = vmatpush.msra.mxu3 %v846_v30  ;;  %v735_v17 = vld [vmem:[#allocation12 + $0x2d0] sm:$0xff] }
  0x5d   : > { %v701_v35 = vld [vmem:[#allocation12 + $0x1c0] sm:$0xff]  ;;  %v702_v36 = vld [vmem:[#allocation12 + $0x1c8] sm:$0xff]  ;;  %913 = vmatpush.msra.mxu0 %v709_v31  ;;  %953 = vmatpush.msra.mxu2 %v710_v32  ;;  %v871_v18 = vld [vmem:[#allocation12 + $0x710] sm:$0xff] }
  0x5e   : > { %v829_v37 = vld [vmem:[#allocation12 + $0x5c0] sm:$0xff]  ;;  %v830_v38 = vld [vmem:[#allocation12 + $0x5c8] sm:$0xff]  ;;  %933 = vmatpush.msra.mxu1 %v837_v33  ;;  %973 = vmatpush.msra.mxu3 %v838_v34  ;;  %v736_v19 = vld [vmem:[#allocation12 + $0x2d8] sm:$0xff] }
  0x5f   : > { %v693_v39 = vld [vmem:[#allocation12 + $0x180] sm:$0xff]  ;;  %v694_v40 = vld [vmem:[#allocation12 + $0x188] sm:$0xff]  ;;  %914 = vmatpush.msra.mxu0 %v701_v35  ;;  %954 = vmatpush.msra.mxu2 %v702_v36  ;;  %v872_v20 = vld [vmem:[#allocation12 + $0x718] sm:$0xff] }
  0x60   : > { %v821_v41 = vld [vmem:[#allocation12 + $0x580] sm:$0xff]  ;;  %v822_v42 = vld [vmem:[#allocation12 + $0x588] sm:$0xff]  ;;  %934 = vmatpush.msra.mxu1 %v829_v37  ;;  %974 = vmatpush.msra.mxu3 %v830_v38  ;;  %v727_v21 = vld [vmem:[#allocation12 + $0x290] sm:$0xff] }
  0x61   : > { %v685_v43 = vld [vmem:[#allocation12 + $0x140] sm:$0xff]  ;;  %v686_v44 = vld [vmem:[#allocation12 + $0x148] sm:$0xff]  ;;  %915 = vmatpush.msra.mxu0 %v693_v39  ;;  %955 = vmatpush.msra.mxu2 %v694_v40  ;;  %v863_v22 = vld [vmem:[#allocation12 + $0x6d0] sm:$0xff] }
  0x62   : > { %v813_v45 = vld [vmem:[#allocation12 + $0x540] sm:$0xff]  ;;  %v814_v46 = vld [vmem:[#allocation12 + $0x548] sm:$0xff]  ;;  %935 = vmatpush.msra.mxu1 %v821_v41  ;;  %975 = vmatpush.msra.mxu3 %v822_v42  ;;  %v728_v23 = vld [vmem:[#allocation12 + $0x298] sm:$0xff] }
  0x63   : > { %v677_v47 = vld [vmem:[#allocation12 + $0x100] sm:$0xff]  ;;  %v678_v48 = vld [vmem:[#allocation12 + $0x108] sm:$0xff]  ;;  %916 = vmatpush.msra.mxu0 %v685_v43  ;;  %956 = vmatpush.msra.mxu2 %v686_v44  ;;  %v864_v24 = vld [vmem:[#allocation12 + $0x6d8] sm:$0xff] }
  0x64   : > { %v805_v49 = vld [vmem:[#allocation12 + $0x500] sm:$0xff]  ;;  %v806_v50 = vld [vmem:[#allocation12 + $0x508] sm:$0xff]  ;;  %936 = vmatpush.msra.mxu1 %v813_v45  ;;  %976 = vmatpush.msra.mxu3 %v814_v46  ;;  %v719_v25 = vld [vmem:[#allocation12 + $0x250] sm:$0xff] }
  0x65   : > { %v669_v51 = vld [vmem:[#allocation12 + $0xc0] sm:$0xff]  ;;  %v670_v52 = vld [vmem:[#allocation12 + $0xc8] sm:$0xff]  ;;  %917 = vmatpush.msra.mxu0 %v677_v47  ;;  %957 = vmatpush.msra.mxu2 %v678_v48  ;;  %v855_v26 = vld [vmem:[#allocation12 + $0x690] sm:$0xff] }
  0x66   : > { %v797_v53 = vld [vmem:[#allocation12 + $0x4c0] sm:$0xff]  ;;  %v798_v54 = vld [vmem:[#allocation12 + $0x4c8] sm:$0xff]  ;;  %937 = vmatpush.msra.mxu1 %v805_v49  ;;  %977 = vmatpush.msra.mxu3 %v806_v50  ;;  %v720_v27 = vld [vmem:[#allocation12 + $0x258] sm:$0xff] }
  0x67   : > { %v661_v55 = vld [vmem:[#allocation12 + $0x80] sm:$0xff]  ;;  %v662_v56 = vld [vmem:[#allocation12 + $0x88] sm:$0xff]  ;;  %918 = vmatpush.msra.mxu0 %v669_v51  ;;  %958 = vmatpush.msra.mxu2 %v670_v52  ;;  %v856_v28 = vld [vmem:[#allocation12 + $0x698] sm:$0xff] }
  0x68   : > { %v789_v57 = vld [vmem:[#allocation12 + $0x480] sm:$0xff]  ;;  %v790_v58 = vld [vmem:[#allocation12 + $0x488] sm:$0xff]  ;;  %938 = vmatpush.msra.mxu1 %v797_v53  ;;  %978 = vmatpush.msra.mxu3 %v798_v54  ;;  %v711_v29 = vld [vmem:[#allocation12 + $0x210] sm:$0xff] }
  0x69   : > { %v653_v59 = vld [vmem:[#allocation12 + $0x40] sm:$0xff]  ;;  %v654_v60 = vld [vmem:[#allocation12 + $0x48] sm:$0xff]  ;;  %919 = vmatpush.msra.mxu0 %v661_v55  ;;  %959 = vmatpush.msra.mxu2 %v662_v56  ;;  %v847_v30 = vld [vmem:[#allocation12 + $0x650] sm:$0xff] }
  0x6a   : > { %v781_v61 = vld [vmem:[#allocation12 + $0x440] sm:$0xff]  ;;  %v782_v62 = vld [vmem:[#allocation12 + $0x448] sm:$0xff]  ;;  %939 = vmatpush.msra.mxu1 %v789_v57  ;;  %979 = vmatpush.msra.mxu3 %v790_v58  ;;  %v712_v31 = vld [vmem:[#allocation12 + $0x218] sm:$0xff] }
  0x6b   : > { %v645_v63 = vld [vmem:[#allocation12] sm:$0xff]  ;;  %v646_v0 = vld [vmem:[#allocation12 + $0x8] sm:$0xff]  ;;  %920 = vmatpush.msra.mxu0 %v653_v59  ;;  %960 = vmatpush.msra.mxu2 %v654_v60  ;;  %v848_v32 = vld [vmem:[#allocation12 + $0x658] sm:$0xff] }
  0x6c   : > { %940 = vmatpush.msra.mxu1 %v781_v61  ;;  %980 = vmatpush.msra.mxu3 %v782_v62  ;;  %v773_v3 = vld [vmem:[#allocation12 + $0x400] sm:$0xff]  ;;  %v774_v4 = vld [vmem:[#allocation12 + $0x408] sm:$0xff]  ;;  %v703_v33 = vld [vmem:[#allocation12 + $0x1d0] sm:$0xff] }
  0x6d   : > { %921 = vmatpush.msra.mxu0 %v645_v63  ;;  %961 = vmatpush.msra.mxu2 %v646_v0  ;;  %v839_v34 = vld [vmem:[#allocation12 + $0x610] sm:$0xff]  ;;  %v704_v35 = vld [vmem:[#allocation12 + $0x1d8] sm:$0xff] }
  0x6e   : > { %941 = vmatpush.msra.mxu1 %v773_v3  ;;  %981 = vmatpush.msra.mxu3 %v774_v4  ;;  %v840_v36 = vld [vmem:[#allocation12 + $0x618] sm:$0xff]  ;;  %v695_v37 = vld [vmem:[#allocation12 + $0x190] sm:$0xff]  ;;  %v769_v4 = vld [vmem:[#allocation12 + $0x3e0] sm:$0xff] }
  0x6f   : > { %986 = vmatpush.msrb.mxu0 %v767_v1  ;;  %1026 = vmatpush.msrb.mxu2 %v768_v2  ;;  %v831_v38 = vld [vmem:[#allocation12 + $0x5d0] sm:$0xff]  ;;  %v696_v39 = vld [vmem:[#allocation12 + $0x198] sm:$0xff] }
  0x70   : > { %1006 = vmatpush.msrb.mxu1 %v895_v6  ;;  %1046 = vmatpush.msrb.mxu3 %v896_v8  ;;  %v832_v40 = vld [vmem:[#allocation12 + $0x5d8] sm:$0xff]  ;;  %v687_v41 = vld [vmem:[#allocation12 + $0x150] sm:$0xff]  ;;  %v761_v8 = vld [vmem:[#allocation12 + $0x3a0] sm:$0xff] }
  0x71   : > { %987 = vmatpush.msrb.mxu0 %v759_v5  ;;  %1027 = vmatpush.msrb.mxu2 %v760_v7  ;;  %v823_v42 = vld [vmem:[#allocation12 + $0x590] sm:$0xff]  ;;  %v688_v43 = vld [vmem:[#allocation12 + $0x158] sm:$0xff]  ;;  %v770_v5 = vld [vmem:[#allocation12 + $0x3e8] sm:$0xff] }
  0x72   : > { %1007 = vmatpush.msrb.mxu1 %v887_v10  ;;  %1047 = vmatpush.msrb.mxu3 %v888_v12  ;;  %v824_v44 = vld [vmem:[#allocation12 + $0x598] sm:$0xff]  ;;  %v679_v45 = vld [vmem:[#allocation12 + $0x110] sm:$0xff]  ;;  %v762_v10 = vld [vmem:[#allocation12 + $0x3a8] sm:$0xff] }
  0x73   : > { %988 = vmatpush.msrb.mxu0 %v751_v9  ;;  %1028 = vmatpush.msrb.mxu2 %v752_v11  ;;  %v815_v46 = vld [vmem:[#allocation12 + $0x550] sm:$0xff]  ;;  %v680_v47 = vld [vmem:[#allocation12 + $0x118] sm:$0xff]  ;;  %v897_v9 = vld [vmem:[#allocation12 + $0x7e0] sm:$0xff] }
  0x74   : > { %1008 = vmatpush.msrb.mxu1 %v879_v14  ;;  %1048 = vmatpush.msrb.mxu3 %v880_v16  ;;  %v816_v48 = vld [vmem:[#allocation12 + $0x558] sm:$0xff]  ;;  %v671_v49 = vld [vmem:[#allocation12 + $0xd0] sm:$0xff]  ;;  %v898_v11 = vld [vmem:[#allocation12 + $0x7e8] sm:$0xff] }
  0x75   : > { %989 = vmatpush.msrb.mxu0 %v743_v13  ;;  %1029 = vmatpush.msrb.mxu2 %v744_v15  ;;  %v807_v50 = vld [vmem:[#allocation12 + $0x510] sm:$0xff]  ;;  %v672_v51 = vld [vmem:[#allocation12 + $0xd8] sm:$0xff]  ;;  %v753_v12 = vld [vmem:[#allocation12 + $0x360] sm:$0xff] }
  0x76   : > { %1009 = vmatpush.msrb.mxu1 %v871_v18  ;;  %1049 = vmatpush.msrb.mxu3 %v872_v20  ;;  %v808_v52 = vld [vmem:[#allocation12 + $0x518] sm:$0xff]  ;;  %v663_v53 = vld [vmem:[#allocation12 + $0x90] sm:$0xff]  ;;  %v889_v13 = vld [vmem:[#allocation12 + $0x7a0] sm:$0xff] }
  0x77   : > { %990 = vmatpush.msrb.mxu0 %v735_v17  ;;  %1030 = vmatpush.msrb.mxu2 %v736_v19  ;;  %v799_v54 = vld [vmem:[#allocation12 + $0x4d0] sm:$0xff]  ;;  %v664_v55 = vld [vmem:[#allocation12 + $0x98] sm:$0xff]  ;;  %v754_v14 = vld [vmem:[#allocation12 + $0x368] sm:$0xff] }
  0x78   : > { %1010 = vmatpush.msrb.mxu1 %v863_v22  ;;  %1050 = vmatpush.msrb.mxu3 %v864_v24  ;;  %v800_v56 = vld [vmem:[#allocation12 + $0x4d8] sm:$0xff]  ;;  %v655_v57 = vld [vmem:[#allocation12 + $0x50] sm:$0xff]  ;;  %v890_v15 = vld [vmem:[#allocation12 + $0x7a8] sm:$0xff] }
  0x79   : > { %991 = vmatpush.msrb.mxu0 %v727_v21  ;;  %1031 = vmatpush.msrb.mxu2 %v728_v23  ;;  %v791_v58 = vld [vmem:[#allocation12 + $0x490] sm:$0xff]  ;;  %v656_v60 = vld [vmem:[#allocation12 + $0x58] sm:$0xff]  ;;  %v745_v16 = vld [vmem:[#allocation12 + $0x320] sm:$0xff] }
  0x7a   : > { %1011 = vmatpush.msrb.mxu1 %v855_v26  ;;  %1051 = vmatpush.msrb.mxu3 %v856_v28  ;;  %v644_v59 = vld [vmem:[#allocation2] sm:$0x3]  ;;  %v792_v61 = vld [vmem:[#allocation12 + $0x498] sm:$0xff]  ;;  %v881_v17 = vld [vmem:[#allocation12 + $0x760] sm:$0xff] }
  0x7b   : > { %992 = vmatpush.msrb.mxu0 %v719_v25  ;;  %1032 = vmatpush.msrb.mxu2 %v720_v27  ;;  %v647_v62 = vld [vmem:[#allocation12 + $0x10] sm:$0xff]  ;;  %v648_v0 = vld [vmem:[#allocation12 + $0x18] sm:$0xff]  ;;  %v2540_v2 = vperm.slane %v644_v59, 0  ;;  %v2542_v3 = vperm.slane %v644_v59, 1  ;;  %v746_v18 = vld [vmem:[#allocation12 + $0x328] sm:$0xff] }
  0x7c   : > { %1012 = vmatpush.msrb.mxu1 %v847_v30  ;;  %1052 = vmatpush.msrb.mxu3 %v848_v32  ;;  %v783_v63 = vld [vmem:[#allocation12 + $0x450] sm:$0xff]  ;;  %v784_v1 = vld [vmem:[#allocation12 + $0x458] sm:$0xff]  ;;  %v882_v19 = vld [vmem:[#allocation12 + $0x768] sm:$0xff] }
  0x7d   : > { %993 = vmatpush.msrb.mxu0 %v711_v29  ;;  %1033 = vmatpush.msrb.mxu2 %v712_v31  ;;  %v775_v6 = vld [vmem:[#allocation12 + $0x410] sm:$0xff]  ;;  %v776_v7 = vld [vmem:[#allocation12 + $0x418] sm:$0xff]  ;;  %v737_v20 = vld [vmem:[#allocation12 + $0x2e0] sm:$0xff] }
  0x7e   : > { %1013 = vmatpush.msrb.mxu1 %v839_v34  ;;  %1053 = vmatpush.msrb.mxu3 %v840_v36  ;;  %v873_v21 = vld [vmem:[#allocation12 + $0x720] sm:$0xff]  ;;  %v738_v22 = vld [vmem:[#allocation12 + $0x2e8] sm:$0xff] }
  0x7f   : > { %994 = vmatpush.msrb.mxu0 %v703_v33  ;;  %1034 = vmatpush.msrb.mxu2 %v704_v35  ;;  %v874_v23 = vld [vmem:[#allocation12 + $0x728] sm:$0xff]  ;;  %v729_v24 = vld [vmem:[#allocation12 + $0x2a0] sm:$0xff] }
  0x80   : > { %1014 = vmatpush.msrb.mxu1 %v831_v38  ;;  %1054 = vmatpush.msrb.mxu3 %v832_v40  ;;  %v865_v25 = vld [vmem:[#allocation12 + $0x6e0] sm:$0xff]  ;;  %v730_v26 = vld [vmem:[#allocation12 + $0x2a8] sm:$0xff] }
  0x81   : > { %995 = vmatpush.msrb.mxu0 %v695_v37  ;;  %1035 = vmatpush.msrb.mxu2 %v696_v39  ;;  %v866_v27 = vld [vmem:[#allocation12 + $0x6e8] sm:$0xff]  ;;  %v721_v28 = vld [vmem:[#allocation12 + $0x260] sm:$0xff] }
  0x82   : > { %1015 = vmatpush.msrb.mxu1 %v823_v42  ;;  %1055 = vmatpush.msrb.mxu3 %v824_v44  ;;  %v857_v29 = vld [vmem:[#allocation12 + $0x6a0] sm:$0xff]  ;;  %v722_v30 = vld [vmem:[#allocation12 + $0x268] sm:$0xff] }
  0x83   : > { %996 = vmatpush.msrb.mxu0 %v687_v41  ;;  %1036 = vmatpush.msrb.mxu2 %v688_v43  ;;  %v858_v31 = vld [vmem:[#allocation12 + $0x6a8] sm:$0xff]  ;;  %v713_v32 = vld [vmem:[#allocation12 + $0x220] sm:$0xff] }
  0x84   : > { %1016 = vmatpush.msrb.mxu1 %v815_v46  ;;  %1056 = vmatpush.msrb.mxu3 %v816_v48  ;;  %v849_v33 = vld [vmem:[#allocation12 + $0x660] sm:$0xff]  ;;  %v714_v34 = vld [vmem:[#allocation12 + $0x228] sm:$0xff] }
  0x85   : > { %997 = vmatpush.msrb.mxu0 %v679_v45  ;;  %1037 = vmatpush.msrb.mxu2 %v680_v47  ;;  %v850_v35 = vld [vmem:[#allocation12 + $0x668] sm:$0xff]  ;;  %v705_v36 = vld [vmem:[#allocation12 + $0x1e0] sm:$0xff] }
  0x86   : > { %1017 = vmatpush.msrb.mxu1 %v807_v50  ;;  %1057 = vmatpush.msrb.mxu3 %v808_v52  ;;  %v841_v37 = vld [vmem:[#allocation12 + $0x620] sm:$0xff]  ;;  %v706_v38 = vld [vmem:[#allocation12 + $0x1e8] sm:$0xff] }
  0x87   : > { %998 = vmatpush.msrb.mxu0 %v671_v49  ;;  %1038 = vmatpush.msrb.mxu2 %v672_v51  ;;  %v842_v39 = vld [vmem:[#allocation12 + $0x628] sm:$0xff]  ;;  %v697_v40 = vld [vmem:[#allocation12 + $0x1a0] sm:$0xff] }
  0x88   : > { %1018 = vmatpush.msrb.mxu1 %v799_v54  ;;  %1058 = vmatpush.msrb.mxu3 %v800_v56  ;;  %v833_v41 = vld [vmem:[#allocation12 + $0x5e0] sm:$0xff]  ;;  %v698_v42 = vld [vmem:[#allocation12 + $0x1a8] sm:$0xff] }
  0x89   : > { %999 = vmatpush.msrb.mxu0 %v663_v53  ;;  %1039 = vmatpush.msrb.mxu2 %v664_v55  ;;  %v834_v43 = vld [vmem:[#allocation12 + $0x5e8] sm:$0xff]  ;;  %v689_v44 = vld [vmem:[#allocation12 + $0x160] sm:$0xff] }
  0x8a   : > { %1019 = vmatpush.msrb.mxu1 %v791_v58  ;;  %1059 = vmatpush.msrb.mxu3 %v792_v61  ;;  %v825_v45 = vld [vmem:[#allocation12 + $0x5a0] sm:$0xff]  ;;  %v690_v46 = vld [vmem:[#allocation12 + $0x168] sm:$0xff] }
  0x8b   : > { %1000 = vmatpush.msrb.mxu0 %v655_v57  ;;  %1040 = vmatpush.msrb.mxu2 %v656_v60  ;;  %v826_v47 = vld [vmem:[#allocation12 + $0x5a8] sm:$0xff]  ;;  %v681_v48 = vld [vmem:[#allocation12 + $0x120] sm:$0xff] }
  0x8c   : > { %1020 = vmatpush.msrb.mxu1 %v783_v63  ;;  %1060 = vmatpush.msrb.mxu3 %v784_v1  ;;  %v817_v49 = vld [vmem:[#allocation12 + $0x560] sm:$0xff]  ;;  %v682_v50 = vld [vmem:[#allocation12 + $0x128] sm:$0xff] }
  0x8d   : > { %1001 = vmatpush.msrb.mxu0 %v647_v62  ;;  %1041 = vmatpush.msrb.mxu2 %v648_v0  ;;  %v818_v51 = vld [vmem:[#allocation12 + $0x568] sm:$0xff]  ;;  %v673_v52 = vld [vmem:[#allocation12 + $0xe0] sm:$0xff] }
  0x8e   : > { %922 = vmatmul.f32.vlgmr.msra.gmra.mxu0 %v2540_v2  ;;  %942 = vmatmul.f32.vlgmr.msra.gmra.mxu1 %v2542_v3  ;;  %v809_v53 = vld [vmem:[#allocation12 + $0x520] sm:$0xff]  ;;  %v674_v54 = vld [vmem:[#allocation12 + $0xe8] sm:$0xff] }
  0x8f   : > { %962 = vmatmul.f32.vlgmr.msra.gmra.mxu2 %v2540_v2  ;;  %1066 = vmatpush.msra.mxu0 %v769_v4  ;;  %v810_v55 = vld [vmem:[#allocation12 + $0x528] sm:$0xff]  ;;  %v665_v56 = vld [vmem:[#allocation12 + $0xa0] sm:$0xff] }
  0x90   : > { %1106 = vmatpush.msra.mxu2 %v770_v5  ;;  %1021 = vmatpush.msrb.mxu1 %v775_v6  ;;  %v801_v57 = vld [vmem:[#allocation12 + $0x4e0] sm:$0xff]  ;;  %v666_v58 = vld [vmem:[#allocation12 + $0xa8] sm:$0xff]  ;;  %v771_v6 = vld [vmem:[#allocation12 + $0x3f0] sm:$0xff] }
  0x91   : > { %1061 = vmatpush.msrb.mxu3 %v776_v7  ;;  %1067 = vmatpush.msra.mxu0 %v761_v8  ;;  %v802_v59 = vld [vmem:[#allocation12 + $0x4e8] sm:$0xff]  ;;  %v657_v60 = vld [vmem:[#allocation12 + $0x60] sm:$0xff]  ;;  %v772_v7 = vld [vmem:[#allocation12 + $0x3f8] sm:$0xff] }
  0x92   : > { %982 = vmatmul.f32.vlgmr.msra.gmra.mxu3 %v2542_v3  ;;  %1086 = vmatpush.msra.mxu1 %v897_v9  ;;  %v793_v61 = vld [vmem:[#allocation12 + $0x4a0] sm:$0xff]  ;;  %v658_v62 = vld [vmem:[#allocation12 + $0x68] sm:$0xff] }
  0x93   : > { %1107 = vmatpush.msra.mxu2 %v762_v10  ;;  %1126 = vmatpush.msra.mxu3 %v898_v11  ;;  %v794_v63 = vld [vmem:[#allocation12 + $0x4a8] sm:$0xff]  ;;  %v649_v0 = vld [vmem:[#allocation12 + $0x20] sm:$0xff]  ;;  %v763_v10 = vld [vmem:[#allocation12 + $0x3b0] sm:$0xff] }
  0x94   : > { %1068 = vmatpush.msra.mxu0 %v753_v12  ;;  %1087 = vmatpush.msra.mxu1 %v889_v13  ;;  %v785_v1 = vld [vmem:[#allocation12 + $0x460] sm:$0xff]  ;;  %v650_v4 = vld [vmem:[#allocation12 + $0x28] sm:$0xff]  ;;  %v899_v11 = vld [vmem:[#allocation12 + $0x7f0] sm:$0xff] }
  0x95   : > { %1108 = vmatpush.msra.mxu2 %v754_v14  ;;  %1127 = vmatpush.msra.mxu3 %v890_v15  ;;  %v786_v5 = vld [vmem:[#allocation12 + $0x468] sm:$0xff]  ;;  %v777_v8 = vld [vmem:[#allocation12 + $0x420] sm:$0xff]  ;;  %v764_v12 = vld [vmem:[#allocation12 + $0x3b8] sm:$0xff] }
  0x96   : > { %1069 = vmatpush.msra.mxu0 %v745_v16  ;;  %1088 = vmatpush.msra.mxu1 %v881_v17  ;;  %v778_v9 = vld [vmem:[#allocation12 + $0x428] sm:$0xff]  ;;  %v900_v13 = vld [vmem:[#allocation12 + $0x7f8] sm:$0xff]  ;;  %v755_v14 = vld [vmem:[#allocation12 + $0x370] sm:$0xff] }
  0x97   : > { %1109 = vmatpush.msra.mxu2 %v746_v18  ;;  %1128 = vmatpush.msra.mxu3 %v882_v19  ;;  %v891_v15 = vld [vmem:[#allocation12 + $0x7b0] sm:$0xff]  ;;  %v756_v16 = vld [vmem:[#allocation12 + $0x378] sm:$0xff] }
  0x98   : > { %1070 = vmatpush.msra.mxu0 %v737_v20  ;;  %1089 = vmatpush.msra.mxu1 %v873_v21  ;;  %v892_v17 = vld [vmem:[#allocation12 + $0x7b8] sm:$0xff]  ;;  %v747_v18 = vld [vmem:[#allocation12 + $0x330] sm:$0xff] }
  0x99   : > { %1110 = vmatpush.msra.mxu2 %v738_v22  ;;  %1129 = vmatpush.msra.mxu3 %v874_v23  ;;  %v883_v19 = vld [vmem:[#allocation12 + $0x770] sm:$0xff]  ;;  %v748_v20 = vld [vmem:[#allocation12 + $0x338] sm:$0xff] }
  0x9a   : > { %1071 = vmatpush.msra.mxu0 %v729_v24  ;;  %1090 = vmatpush.msra.mxu1 %v865_v25  ;;  %v884_v21 = vld [vmem:[#allocation12 + $0x778] sm:$0xff]  ;;  %v739_v22 = vld [vmem:[#allocation12 + $0x2f0] sm:$0xff] }
  0x9b   : > { %1111 = vmatpush.msra.mxu2 %v730_v26  ;;  %1130 = vmatpush.msra.mxu3 %v866_v27  ;;  %v875_v23 = vld [vmem:[#allocation12 + $0x730] sm:$0xff]  ;;  %v740_v24 = vld [vmem:[#allocation12 + $0x2f8] sm:$0xff] }
  0x9c   : > { %1072 = vmatpush.msra.mxu0 %v721_v28  ;;  %1091 = vmatpush.msra.mxu1 %v857_v29  ;;  %v876_v25 = vld [vmem:[#allocation12 + $0x738] sm:$0xff]  ;;  %v731_v26 = vld [vmem:[#allocation12 + $0x2b0] sm:$0xff] }
  0x9d   : > { %1112 = vmatpush.msra.mxu2 %v722_v30  ;;  %1131 = vmatpush.msra.mxu3 %v858_v31  ;;  %v867_v27 = vld [vmem:[#allocation12 + $0x6f0] sm:$0xff]  ;;  %v732_v28 = vld [vmem:[#allocation12 + $0x2b8] sm:$0xff] }
  0x9e   : > { %1073 = vmatpush.msra.mxu0 %v713_v32  ;;  %1092 = vmatpush.msra.mxu1 %v849_v33  ;;  %v868_v29 = vld [vmem:[#allocation12 + $0x6f8] sm:$0xff]  ;;  %v723_v30 = vld [vmem:[#allocation12 + $0x270] sm:$0xff] }
  0x9f   : > { %1113 = vmatpush.msra.mxu2 %v714_v34  ;;  %1132 = vmatpush.msra.mxu3 %v850_v35  ;;  %v859_v31 = vld [vmem:[#allocation12 + $0x6b0] sm:$0xff]  ;;  %v724_v32 = vld [vmem:[#allocation12 + $0x278] sm:$0xff] }
  0xa0   : > { %1074 = vmatpush.msra.mxu0 %v705_v36  ;;  %1093 = vmatpush.msra.mxu1 %v841_v37  ;;  %v860_v33 = vld [vmem:[#allocation12 + $0x6b8] sm:$0xff]  ;;  %v715_v34 = vld [vmem:[#allocation12 + $0x230] sm:$0xff] }
  0xa1   : > { %1114 = vmatpush.msra.mxu2 %v706_v38  ;;  %1133 = vmatpush.msra.mxu3 %v842_v39  ;;  %v851_v35 = vld [vmem:[#allocation12 + $0x670] sm:$0xff]  ;;  %v716_v36 = vld [vmem:[#allocation12 + $0x238] sm:$0xff] }
  0xa2   : > { %1075 = vmatpush.msra.mxu0 %v697_v40  ;;  %1094 = vmatpush.msra.mxu1 %v833_v41  ;;  %v852_v37 = vld [vmem:[#allocation12 + $0x678] sm:$0xff]  ;;  %v707_v38 = vld [vmem:[#allocation12 + $0x1f0] sm:$0xff] }
  0xa3   : > { %1115 = vmatpush.msra.mxu2 %v698_v42  ;;  %1134 = vmatpush.msra.mxu3 %v834_v43  ;;  %v843_v39 = vld [vmem:[#allocation12 + $0x630] sm:$0xff]  ;;  %v708_v40 = vld [vmem:[#allocation12 + $0x1f8] sm:$0xff] }
  0xa4   : > { %1076 = vmatpush.msra.mxu0 %v689_v44  ;;  %1095 = vmatpush.msra.mxu1 %v825_v45  ;;  %v844_v41 = vld [vmem:[#allocation12 + $0x638] sm:$0xff]  ;;  %v699_v42 = vld [vmem:[#allocation12 + $0x1b0] sm:$0xff] }
  0xa5   : > { %1116 = vmatpush.msra.mxu2 %v690_v46  ;;  %1135 = vmatpush.msra.mxu3 %v826_v47  ;;  %v835_v43 = vld [vmem:[#allocation12 + $0x5f0] sm:$0xff]  ;;  %v700_v44 = vld [vmem:[#allocation12 + $0x1b8] sm:$0xff] }
  0xa6   : > { %1077 = vmatpush.msra.mxu0 %v681_v48  ;;  %1096 = vmatpush.msra.mxu1 %v817_v49  ;;  %v836_v45 = vld [vmem:[#allocation12 + $0x5f8] sm:$0xff]  ;;  %v691_v46 = vld [vmem:[#allocation12 + $0x170] sm:$0xff] }
  0xa7   : > { %1117 = vmatpush.msra.mxu2 %v682_v50  ;;  %1136 = vmatpush.msra.mxu3 %v818_v51  ;;  %v827_v47 = vld [vmem:[#allocation12 + $0x5b0] sm:$0xff]  ;;  %v692_v48 = vld [vmem:[#allocation12 + $0x178] sm:$0xff] }
  0xa8   : > { %1078 = vmatpush.msra.mxu0 %v673_v52  ;;  %1097 = vmatpush.msra.mxu1 %v809_v53  ;;  %v828_v49 = vld [vmem:[#allocation12 + $0x5b8] sm:$0xff]  ;;  %v683_v50 = vld [vmem:[#allocation12 + $0x130] sm:$0xff] }
  0xa9   : > { %1118 = vmatpush.msra.mxu2 %v674_v54  ;;  %1137 = vmatpush.msra.mxu3 %v810_v55  ;;  %v819_v51 = vld [vmem:[#allocation12 + $0x570] sm:$0xff]  ;;  %v684_v52 = vld [vmem:[#allocation12 + $0x138] sm:$0xff] }
  0xaa   : > { %1079 = vmatpush.msra.mxu0 %v665_v56  ;;  %1098 = vmatpush.msra.mxu1 %v801_v57  ;;  %v820_v53 = vld [vmem:[#allocation12 + $0x578] sm:$0xff]  ;;  %v675_v54 = vld [vmem:[#allocation12 + $0xf0] sm:$0xff] }
  0xab   : > { %1119 = vmatpush.msra.mxu2 %v666_v58  ;;  %1138 = vmatpush.msra.mxu3 %v802_v59  ;;  %v811_v55 = vld [vmem:[#allocation12 + $0x530] sm:$0xff]  ;;  %v676_v56 = vld [vmem:[#allocation12 + $0xf8] sm:$0xff] }
  0xac   : > { %1080 = vmatpush.msra.mxu0 %v657_v60  ;;  %1099 = vmatpush.msra.mxu1 %v793_v61  ;;  %v812_v57 = vld [vmem:[#allocation12 + $0x538] sm:$0xff]  ;;  %v667_v58 = vld [vmem:[#allocation12 + $0xb0] sm:$0xff] }
  0xad   : > { %1120 = vmatpush.msra.mxu2 %v658_v62  ;;  %1139 = vmatpush.msra.mxu3 %v794_v63  ;;  %v803_v59 = vld [vmem:[#allocation12 + $0x4f0] sm:$0xff]  ;;  %v668_v60 = vld [vmem:[#allocation12 + $0xb8] sm:$0xff] }
  0xae   : > { %1081 = vmatpush.msra.mxu0 %v649_v0  ;;  %1100 = vmatpush.msra.mxu1 %v785_v1  ;;  %v804_v61 = vld [vmem:[#allocation12 + $0x4f8] sm:$0xff]  ;;  %v659_v62 = vld [vmem:[#allocation12 + $0x70] sm:$0xff] }
  0xaf   : > { %1121 = vmatpush.msra.mxu2 %v650_v4  ;;  %1140 = vmatpush.msra.mxu3 %v786_v5  ;;  %v795_v63 = vld [vmem:[#allocation12 + $0x4b0] sm:$0xff]  ;;  %v660_v0 = vld [vmem:[#allocation12 + $0x78] sm:$0xff] }
  0xb0   : > { %1002 = vmatmul.f32.vlgmr.msrb.gmra.mxu0 %v2540_v2  ;;  %1022 = vmatmul.f32.vlgmr.msrb.gmra.mxu1 %v2542_v3  ;;  %v796_v1 = vld [vmem:[#allocation12 + $0x4b8] sm:$0xff]  ;;  %v651_v4 = vld [vmem:[#allocation12 + $0x30] sm:$0xff] }
  0xb1   : > { %1042 = vmatmul.f32.vlgmr.msrb.gmra.mxu2 %v2540_v2  ;;  %1146 = vmatpush.msrb.mxu0 %v771_v6  ;;  %v787_v5 = vld [vmem:[#allocation12 + $0x470] sm:$0xff]  ;;  %v652_v6 = vld [vmem:[#allocation12 + $0x38] sm:$0xff] }
  0xb2   : > { %1186 = vmatpush.msrb.mxu2 %v772_v7  ;;  %1101 = vmatpush.msra.mxu1 %v777_v8  ;;  %v788_v7 = vld [vmem:[#allocation12 + $0x478] sm:$0xff]  ;;  %v508_v8 = vld [vmem:[#allocation10 + $0x3c0] sm:$0xff] }
  0xb3   : > { %1141 = vmatpush.msra.mxu3 %v778_v9  ;;  %1147 = vmatpush.msrb.mxu0 %v763_v10  ;;  %v509_v9 = vld [vmem:[#allocation10 + $0x3c8] sm:$0xff]  ;;  %v779_v10 = vld [vmem:[#allocation12 + $0x430] sm:$0xff] }
  0xb4   : > { %1062 = vmatmul.f32.vlgmr.msrb.gmra.mxu3 %v2542_v3  ;;  %1166 = vmatpush.msrb.mxu1 %v899_v11  ;;  %v780_v11 = vld [vmem:[#allocation12 + $0x438] sm:$0xff] }
  0xb5   : > { %1187 = vmatpush.msrb.mxu2 %v764_v12  ;;  %1206 = vmatpush.msrb.mxu3 %v900_v13  ;;  %v500_v12 = vld [vmem:[#allocation10 + $0x380] sm:$0xff] }
  0xb6   : > { %1148 = vmatpush.msrb.mxu0 %v755_v14  ;;  %1167 = vmatpush.msrb.mxu1 %v891_v15  ;;  %v636_v13 = vld [vmem:[#allocation10 + $0x7c0] sm:$0xff]  ;;  %v501_v14 = vld [vmem:[#allocation10 + $0x388] sm:$0xff] }
  0xb7   : > { %1188 = vmatpush.msrb.mxu2 %v756_v16  ;;  %1207 = vmatpush.msrb.mxu3 %v892_v17  ;;  %v637_v15 = vld [vmem:[#allocation10 + $0x7c8] sm:$0xff]  ;;  %v492_v16 = vld [vmem:[#allocation10 + $0x340] sm:$0xff] }
  0xb8   : > { %1149 = vmatpush.msrb.mxu0 %v747_v18  ;;  %1168 = vmatpush.msrb.mxu1 %v883_v19  ;;  %v628_v17 = vld [vmem:[#allocation10 + $0x780] sm:$0xff]  ;;  %v493_v18 = vld [vmem:[#allocation10 + $0x348] sm:$0xff] }
  0xb9   : > { %1189 = vmatpush.msrb.mxu2 %v748_v20  ;;  %1208 = vmatpush.msrb.mxu3 %v884_v21  ;;  %v629_v19 = vld [vmem:[#allocation10 + $0x788] sm:$0xff]  ;;  %v484_v20 = vld [vmem:[#allocation10 + $0x300] sm:$0xff] }
  0xba   : > { %1150 = vmatpush.msrb.mxu0 %v739_v22  ;;  %1169 = vmatpush.msrb.mxu1 %v875_v23  ;;  %v620_v21 = vld [vmem:[#allocation10 + $0x740] sm:$0xff]  ;;  %v485_v22 = vld [vmem:[#allocation10 + $0x308] sm:$0xff] }
  0xbb   : > { %1190 = vmatpush.msrb.mxu2 %v740_v24  ;;  %1209 = vmatpush.msrb.mxu3 %v876_v25  ;;  %v621_v23 = vld [vmem:[#allocation10 + $0x748] sm:$0xff]  ;;  %v476_v24 = vld [vmem:[#allocation10 + $0x2c0] sm:$0xff] }
  0xbc   : > { %1151 = vmatpush.msrb.mxu0 %v731_v26  ;;  %1170 = vmatpush.msrb.mxu1 %v867_v27  ;;  %v612_v25 = vld [vmem:[#allocation10 + $0x700] sm:$0xff]  ;;  %v477_v26 = vld [vmem:[#allocation10 + $0x2c8] sm:$0xff] }
  0xbd   : > { %1191 = vmatpush.msrb.mxu2 %v732_v28  ;;  %1210 = vmatpush.msrb.mxu3 %v868_v29  ;;  %v613_v27 = vld [vmem:[#allocation10 + $0x708] sm:$0xff]  ;;  %v468_v28 = vld [vmem:[#allocation10 + $0x280] sm:$0xff] }
  0xbe   : > { %1152 = vmatpush.msrb.mxu0 %v723_v30  ;;  %1171 = vmatpush.msrb.mxu1 %v859_v31  ;;  %v604_v29 = vld [vmem:[#allocation10 + $0x6c0] sm:$0xff]  ;;  %v469_v30 = vld [vmem:[#allocation10 + $0x288] sm:$0xff] }
  0xbf   : > { %1192 = vmatpush.msrb.mxu2 %v724_v32  ;;  %1211 = vmatpush.msrb.mxu3 %v860_v33  ;;  %v605_v31 = vld [vmem:[#allocation10 + $0x6c8] sm:$0xff]  ;;  %v460_v32 = vld [vmem:[#allocation10 + $0x240] sm:$0xff] }
  0xc0   : > { %1153 = vmatpush.msrb.mxu0 %v715_v34  ;;  %1172 = vmatpush.msrb.mxu1 %v851_v35  ;;  %v596_v33 = vld [vmem:[#allocation10 + $0x680] sm:$0xff]  ;;  %v461_v34 = vld [vmem:[#allocation10 + $0x248] sm:$0xff] }
  0xc1   : > { %1193 = vmatpush.msrb.mxu2 %v716_v36  ;;  %1212 = vmatpush.msrb.mxu3 %v852_v37  ;;  %v597_v35 = vld [vmem:[#allocation10 + $0x688] sm:$0xff]  ;;  %v452_v36 = vld [vmem:[#allocation10 + $0x200] sm:$0xff] }
  0xc2   : > { %1154 = vmatpush.msrb.mxu0 %v707_v38  ;;  %1173 = vmatpush.msrb.mxu1 %v843_v39  ;;  %v588_v37 = vld [vmem:[#allocation10 + $0x640] sm:$0xff]  ;;  %v453_v38 = vld [vmem:[#allocation10 + $0x208] sm:$0xff] }
  0xc3   : > { %1194 = vmatpush.msrb.mxu2 %v708_v40  ;;  %1213 = vmatpush.msrb.mxu3 %v844_v41  ;;  %v589_v39 = vld [vmem:[#allocation10 + $0x648] sm:$0xff]  ;;  %v444_v40 = vld [vmem:[#allocation10 + $0x1c0] sm:$0xff] }
  0xc4   : > { %1155 = vmatpush.msrb.mxu0 %v699_v42  ;;  %1174 = vmatpush.msrb.mxu1 %v835_v43  ;;  %v580_v41 = vld [vmem:[#allocation10 + $0x600] sm:$0xff]  ;;  %v445_v42 = vld [vmem:[#allocation10 + $0x1c8] sm:$0xff] }
  0xc5   : > { %1195 = vmatpush.msrb.mxu2 %v700_v44  ;;  %1214 = vmatpush.msrb.mxu3 %v836_v45  ;;  %v581_v43 = vld [vmem:[#allocation10 + $0x608] sm:$0xff]  ;;  %v436_v44 = vld [vmem:[#allocation10 + $0x180] sm:$0xff] }
  0xc6   : > { %1156 = vmatpush.msrb.mxu0 %v691_v46  ;;  %1175 = vmatpush.msrb.mxu1 %v827_v47  ;;  %v572_v45 = vld [vmem:[#allocation10 + $0x5c0] sm:$0xff]  ;;  %v437_v46 = vld [vmem:[#allocation10 + $0x188] sm:$0xff] }
  0xc7   : > { %1196 = vmatpush.msrb.mxu2 %v692_v48  ;;  %1215 = vmatpush.msrb.mxu3 %v828_v49  ;;  %v573_v47 = vld [vmem:[#allocation10 + $0x5c8] sm:$0xff]  ;;  %v428_v48 = vld [vmem:[#allocation10 + $0x140] sm:$0xff] }
  0xc8   : > { %1157 = vmatpush.msrb.mxu0 %v683_v50  ;;  %1176 = vmatpush.msrb.mxu1 %v819_v51  ;;  %v564_v49 = vld [vmem:[#allocation10 + $0x580] sm:$0xff]  ;;  %v429_v50 = vld [vmem:[#allocation10 + $0x148] sm:$0xff] }
  0xc9   : > { %1197 = vmatpush.msrb.mxu2 %v684_v52  ;;  %1216 = vmatpush.msrb.mxu3 %v820_v53  ;;  %v565_v51 = vld [vmem:[#allocation10 + $0x588] sm:$0xff]  ;;  %v420_v52 = vld [vmem:[#allocation10 + $0x100] sm:$0xff] }
  0xca   : > { %1158 = vmatpush.msrb.mxu0 %v675_v54  ;;  %1177 = vmatpush.msrb.mxu1 %v811_v55  ;;  %v556_v53 = vld [vmem:[#allocation10 + $0x540] sm:$0xff]  ;;  %v421_v54 = vld [vmem:[#allocation10 + $0x108] sm:$0xff] }
  0xcb   : > { %1198 = vmatpush.msrb.mxu2 %v676_v56  ;;  %1217 = vmatpush.msrb.mxu3 %v812_v57  ;;  %v557_v55 = vld [vmem:[#allocation10 + $0x548] sm:$0xff]  ;;  %v412_v56 = vld [vmem:[#allocation10 + $0xc0] sm:$0xff] }
  0xcc   : > { %1159 = vmatpush.msrb.mxu0 %v667_v58  ;;  %1178 = vmatpush.msrb.mxu1 %v803_v59  ;;  %v548_v57 = vld [vmem:[#allocation10 + $0x500] sm:$0xff]  ;;  %v413_v58 = vld [vmem:[#allocation10 + $0xc8] sm:$0xff] }
  0xcd   : > { %1199 = vmatpush.msrb.mxu2 %v668_v60  ;;  %1218 = vmatpush.msrb.mxu3 %v804_v61  ;;  %v549_v59 = vld [vmem:[#allocation10 + $0x508] sm:$0xff]  ;;  %v404_v60 = vld [vmem:[#allocation10 + $0x80] sm:$0xff] }
  0xce   : > { %1160 = vmatpush.msrb.mxu0 %v659_v62  ;;  %1179 = vmatpush.msrb.mxu1 %v795_v63  ;;  %v540_v61 = vld [vmem:[#allocation10 + $0x4c0] sm:$0xff]  ;;  %v405_v62 = vld [vmem:[#allocation10 + $0x88] sm:$0xff] }
  0xcf   : > { %1200 = vmatpush.msrb.mxu2 %v660_v0  ;;  %1219 = vmatpush.msrb.mxu3 %v796_v1  ;;  %v541_v63 = vld [vmem:[#allocation10 + $0x4c8] sm:$0xff]  ;;  %v396_v0 = vld [vmem:[#allocation10 + $0x40] sm:$0xff] }
  0xd0   : > { %1161 = vmatpush.msrb.mxu0 %v651_v4  ;;  %1180 = vmatpush.msrb.mxu1 %v787_v5  ;;  %v532_v1 = vld [vmem:[#allocation10 + $0x480] sm:$0xff]  ;;  %v387_v4 = vld [vmem:[%s2517_s14] sm:$0x3]  ;;  %v397_v5 = vld [vmem:[#allocation10 + $0x48] sm:$0xff] }
  0xd1   : > { %1201 = vmatpush.msrb.mxu2 %v652_v6  ;;  %1220 = vmatpush.msrb.mxu3 %v788_v7  ;;  %v533_v6 = vld [vmem:[#allocation10 + $0x488] sm:$0xff]  ;;  %v524_v7 = vld [vmem:[#allocation10 + $0x440] sm:$0xff] }
  0xd2   : > { %1082 = vmatmul.f32.vlgmr.msra.gmra.mxu0 %v2540_v2  ;;  %1102 = vmatmul.f32.vlgmr.msra.gmra.mxu1 %v2542_v3 }
  0xd3   : > { %1122 = vmatmul.f32.vlgmr.msra.gmra.mxu2 %v2540_v2  ;;  %1231 = vmatpush.msra.mxu0 %v508_v8  ;;  %v389_v8 = vld [vmem:[#allocation10 + $0x8] sm:$0xff] }
  0xd4   : > { %1271 = vmatpush.msra.mxu2 %v509_v9  ;;  %1181 = vmatpush.msrb.mxu1 %v779_v10  ;;  %v525_v9 = vld [vmem:[#allocation10 + $0x448] sm:$0xff]  ;;  %v2561_v10 = vperm.slane %v387_v4, 0 }
  0xd5   : > { %1221 = vmatpush.msrb.mxu3 %v780_v11  ;;  %1232 = vmatpush.msra.mxu0 %v500_v12  ;;  %v511_v11 = vld [vmem:[#allocation10 + $0x3d8] sm:$0xff]  ;;  %v516_v12 = vld [vmem:[#allocation10 + $0x400] sm:$0xff] }
  0xd6   : > { %1142 = vmatmul.f32.vlgmr.msra.gmra.mxu3 %v2542_v3  ;;  %1251 = vmatpush.msra.mxu1 %v636_v13  ;;  %v517_v13 = vld [vmem:[#allocation10 + $0x408] sm:$0xff] }
  0xd7   : > { %1272 = vmatpush.msra.mxu2 %v501_v14  ;;  %1291 = vmatpush.msra.mxu3 %v637_v15  ;;  %v2563_v14 = vperm.slane %v387_v4, 1  ;;  %v502_v15 = vld [vmem:[#allocation10 + $0x390] sm:$0xff]  ;;  %v543_v4 = vld [vmem:[#allocation10 + $0x4d8] sm:$0xff] }
  0xd8   : > { %1233 = vmatpush.msra.mxu0 %v492_v16  ;;  %1252 = vmatpush.msra.mxu1 %v628_v17  ;;  %v638_v16 = vld [vmem:[#allocation10 + $0x7d0] sm:$0xff]  ;;  %v503_v17 = vld [vmem:[#allocation10 + $0x398] sm:$0xff] }
  0xd9   : > { %1273 = vmatpush.msra.mxu2 %v493_v18  ;;  %1292 = vmatpush.msra.mxu3 %v629_v19  ;;  %v639_v18 = vld [vmem:[#allocation10 + $0x7d8] sm:$0xff]  ;;  %v494_v19 = vld [vmem:[#allocation10 + $0x350] sm:$0xff] }
  0xda   : > { %1234 = vmatpush.msra.mxu0 %v484_v20  ;;  %1253 = vmatpush.msra.mxu1 %v620_v21  ;;  %v630_v20 = vld [vmem:[#allocation10 + $0x790] sm:$0xff]  ;;  %v495_v21 = vld [vmem:[#allocation10 + $0x358] sm:$0xff] }
  0xdb   : > { %1274 = vmatpush.msra.mxu2 %v485_v22  ;;  %1293 = vmatpush.msra.mxu3 %v621_v23  ;;  %v631_v22 = vld [vmem:[#allocation10 + $0x798] sm:$0xff]  ;;  %v486_v23 = vld [vmem:[#allocation10 + $0x310] sm:$0xff] }
  0xdc   : > { %1235 = vmatpush.msra.mxu0 %v476_v24  ;;  %1254 = vmatpush.msra.mxu1 %v612_v25  ;;  %v622_v24 = vld [vmem:[#allocation10 + $0x750] sm:$0xff]  ;;  %v487_v25 = vld [vmem:[#allocation10 + $0x318] sm:$0xff] }
  0xdd   : > { %1275 = vmatpush.msra.mxu2 %v477_v26  ;;  %1294 = vmatpush.msra.mxu3 %v613_v27  ;;  %v623_v26 = vld [vmem:[#allocation10 + $0x758] sm:$0xff]  ;;  %v478_v27 = vld [vmem:[#allocation10 + $0x2d0] sm:$0xff] }
  0xde   : > { %1236 = vmatpush.msra.mxu0 %v468_v28  ;;  %1255 = vmatpush.msra.mxu1 %v604_v29  ;;  %v614_v28 = vld [vmem:[#allocation10 + $0x710] sm:$0xff]  ;;  %v479_v29 = vld [vmem:[#allocation10 + $0x2d8] sm:$0xff] }
  0xdf   : > { %1276 = vmatpush.msra.mxu2 %v469_v30  ;;  %1295 = vmatpush.msra.mxu3 %v605_v31  ;;  %v615_v30 = vld [vmem:[#allocation10 + $0x718] sm:$0xff]  ;;  %v470_v31 = vld [vmem:[#allocation10 + $0x290] sm:$0xff] }
  0xe0   : > { %1237 = vmatpush.msra.mxu0 %v460_v32  ;;  %1256 = vmatpush.msra.mxu1 %v596_v33  ;;  %v606_v32 = vld [vmem:[#allocation10 + $0x6d0] sm:$0xff]  ;;  %v471_v33 = vld [vmem:[#allocation10 + $0x298] sm:$0xff] }
  0xe1   : > { %1277 = vmatpush.msra.mxu2 %v461_v34  ;;  %1296 = vmatpush.msra.mxu3 %v597_v35  ;;  %v607_v34 = vld [vmem:[#allocation10 + $0x6d8] sm:$0xff]  ;;  %v462_v35 = vld [vmem:[#allocation10 + $0x250] sm:$0xff] }
  0xe2   : > { %1238 = vmatpush.msra.mxu0 %v452_v36  ;;  %1257 = vmatpush.msra.mxu1 %v588_v37  ;;  %v598_v36 = vld [vmem:[#allocation10 + $0x690] sm:$0xff]  ;;  %v463_v37 = vld [vmem:[#allocation10 + $0x258] sm:$0xff] }
  0xe3   : > { %1278 = vmatpush.msra.mxu2 %v453_v38  ;;  %1297 = vmatpush.msra.mxu3 %v589_v39  ;;  %v599_v38 = vld [vmem:[#allocation10 + $0x698] sm:$0xff]  ;;  %v454_v39 = vld [vmem:[#allocation10 + $0x210] sm:$0xff] }
  0xe4   : > { %1239 = vmatpush.msra.mxu0 %v444_v40  ;;  %1258 = vmatpush.msra.mxu1 %v580_v41  ;;  %v590_v40 = vld [vmem:[#allocation10 + $0x650] sm:$0xff]  ;;  %v455_v41 = vld [vmem:[#allocation10 + $0x218] sm:$0xff] }
  0xe5   : > { %1279 = vmatpush.msra.mxu2 %v445_v42  ;;  %1298 = vmatpush.msra.mxu3 %v581_v43  ;;  %v591_v42 = vld [vmem:[#allocation10 + $0x658] sm:$0xff]  ;;  %v446_v43 = vld [vmem:[#allocation10 + $0x1d0] sm:$0xff] }
  0xe6   : > { %1240 = vmatpush.msra.mxu0 %v436_v44  ;;  %1259 = vmatpush.msra.mxu1 %v572_v45  ;;  %v582_v44 = vld [vmem:[#allocation10 + $0x610] sm:$0xff]  ;;  %v447_v45 = vld [vmem:[#allocation10 + $0x1d8] sm:$0xff] }
  0xe7   : > { %1280 = vmatpush.msra.mxu2 %v437_v46  ;;  %1299 = vmatpush.msra.mxu3 %v573_v47  ;;  %v583_v46 = vld [vmem:[#allocation10 + $0x618] sm:$0xff]  ;;  %v438_v47 = vld [vmem:[#allocation10 + $0x190] sm:$0xff] }
  0xe8   : > { %1241 = vmatpush.msra.mxu0 %v428_v48  ;;  %1260 = vmatpush.msra.mxu1 %v564_v49  ;;  %v574_v48 = vld [vmem:[#allocation10 + $0x5d0] sm:$0xff]  ;;  %v439_v49 = vld [vmem:[#allocation10 + $0x198] sm:$0xff] }
  0xe9   : > { %1281 = vmatpush.msra.mxu2 %v429_v50  ;;  %1300 = vmatpush.msra.mxu3 %v565_v51  ;;  %v575_v50 = vld [vmem:[#allocation10 + $0x5d8] sm:$0xff]  ;;  %v430_v51 = vld [vmem:[#allocation10 + $0x150] sm:$0xff] }
  0xea   : > { %1242 = vmatpush.msra.mxu0 %v420_v52  ;;  %1261 = vmatpush.msra.mxu1 %v556_v53  ;;  %v566_v52 = vld [vmem:[#allocation10 + $0x590] sm:$0xff]  ;;  %v431_v53 = vld [vmem:[#allocation10 + $0x158] sm:$0xff] }
  0xeb   : > { %1282 = vmatpush.msra.mxu2 %v421_v54  ;;  %1301 = vmatpush.msra.mxu3 %v557_v55  ;;  %v567_v54 = vld [vmem:[#allocation10 + $0x598] sm:$0xff]  ;;  %v422_v55 = vld [vmem:[#allocation10 + $0x110] sm:$0xff] }
  0xec   : > { %1162 = vmatmul.f32.vlgmr.msrb.gmra.mxu0 %v2540_v2  ;;  %1202 = vmatmul.f32.vlgmr.msrb.gmra.mxu2 %v2540_v2  ;;  %v388_v2 = vld [vmem:[#allocation10] sm:$0xff] }
  0xed   : > { %1243 = vmatpush.msra.mxu0 %v412_v56  ;;  %1262 = vmatpush.msra.mxu1 %v548_v57  ;;  %v558_v56 = vld [vmem:[#allocation10 + $0x550] sm:$0xff]  ;;  %v423_v57 = vld [vmem:[#allocation10 + $0x118] sm:$0xff] }
  0xee   : > { %1283 = vmatpush.msra.mxu2 %v413_v58  ;;  %1302 = vmatpush.msra.mxu3 %v549_v59  ;;  %v559_v58 = vld [vmem:[#allocation10 + $0x558] sm:$0xff]  ;;  %v414_v59 = vld [vmem:[#allocation10 + $0xd0] sm:$0xff] }
  0xef   : > { %1182 = vmatmul.f32.vlgmr.msrb.gmra.mxu1 %v2542_v3  ;;  %1222 = vmatmul.f32.vlgmr.msrb.gmra.mxu3 %v2542_v3  ;;  %v510_v3 = vld [vmem:[#allocation10 + $0x3d0] sm:$0xff] }
  0xf0   : > { %1244 = vmatpush.msra.mxu0 %v404_v60  ;;  %1263 = vmatpush.msra.mxu1 %v540_v61  ;;  %v550_v60 = vld [vmem:[#allocation10 + $0x510] sm:$0xff]  ;;  %v415_v61 = vld [vmem:[#allocation10 + $0xd8] sm:$0xff] }
  0xf1   : > { %1284 = vmatpush.msra.mxu2 %v405_v62  ;;  %1303 = vmatpush.msra.mxu3 %v541_v63  ;;  %v551_v62 = vld [vmem:[#allocation10 + $0x518] sm:$0xff]  ;;  %v406_v63 = vld [vmem:[#allocation10 + $0x90] sm:$0xff] }
  0xf2   : > { %1245 = vmatpush.msra.mxu0 %v396_v0  ;;  %1264 = vmatpush.msra.mxu1 %v532_v1  ;;  %v542_v0 = vld [vmem:[#allocation10 + $0x4d0] sm:$0xff]  ;;  %v407_v1 = vld [vmem:[#allocation10 + $0x98] sm:$0xff] }
  0xf3   : > { %1285 = vmatpush.msra.mxu2 %v397_v5  ;;  %1304 = vmatpush.msra.mxu3 %v533_v6  ;;  %v398_v5 = vld [vmem:[#allocation10 + $0x50] sm:$0xff] }
  0xf4   : > { %1246 = vmatpush.msra.mxu0 %v388_v2  ;;  %1265 = vmatpush.msra.mxu1 %v524_v7  ;;  %v534_v6 = vld [vmem:[#allocation10 + $0x490] sm:$0xff]  ;;  %v399_v2 = vld [vmem:[#allocation10 + $0x58] sm:$0xff] }
  0xf5   : > { %1286 = vmatpush.msra.mxu2 %v389_v8  ;;  %1305 = vmatpush.msra.mxu3 %v525_v9  ;;  %v535_v7 = vld [vmem:[#allocation10 + $0x498] sm:$0xff]  ;;  %v390_v8 = vld [vmem:[#allocation10 + $0x10] sm:$0xff] }
  0xf6   : > { %1247 = vmatmul.f32.vlgmr.msra.gmra.mxu0 %v2561_v10  ;;  %1287 = vmatmul.f32.vlgmr.msra.gmra.mxu2 %v2561_v10  ;;  %v526_v9 = vld [vmem:[#allocation10 + $0x450] sm:$0xff] }
  0xf7   : > { %1311 = vmatpush.msrb.mxu0 %v510_v3  ;;  %1351 = vmatpush.msrb.mxu2 %v511_v11  ;;  %v391_v3 = vld [vmem:[#allocation10 + $0x18] sm:$0xff] }
  0xf8   : > { %1266 = vmatpush.msra.mxu1 %v516_v12  ;;  %1306 = vmatpush.msra.mxu3 %v517_v13  ;;  %v527_v11 = vld [vmem:[#allocation10 + $0x458] sm:$0xff]  ;;  %v512_v12 = vld [vmem:[#allocation10 + $0x3e0] sm:$0xff]  ;;  %v513_v13 = vld [vmem:[#allocation10 + $0x3e8] sm:$0xff] }
  0xf9   : > { %1267 = vmatmul.f32.vlgmr.msra.gmra.mxu1 %v2563_v14  ;;  %1307 = vmatmul.f32.vlgmr.msra.gmra.mxu3 %v2563_v14 }
  0xfa   : > { %1312 = vmatpush.msrb.mxu0 %v502_v15  ;;  %1331 = vmatpush.msrb.mxu1 %v638_v16  ;;  %v518_v15 = vld [vmem:[#allocation10 + $0x410] sm:$0xff]  ;;  %v519_v16 = vld [vmem:[#allocation10 + $0x418] sm:$0xff] }
  0xfb   : > { %1352 = vmatpush.msrb.mxu2 %v503_v17  ;;  %1371 = vmatpush.msrb.mxu3 %v639_v18  ;;  %v504_v17 = vld [vmem:[#allocation10 + $0x3a0] sm:$0xff] }
  0xfc   : > { %1313 = vmatpush.msrb.mxu0 %v494_v19  ;;  %1332 = vmatpush.msrb.mxu1 %v630_v20  ;;  %v640_v18 = vld [vmem:[#allocation10 + $0x7e0] sm:$0xff]  ;;  %v505_v19 = vld [vmem:[#allocation10 + $0x3a8] sm:$0xff] }
  0xfd   : > { %1353 = vmatpush.msrb.mxu2 %v495_v21  ;;  %1372 = vmatpush.msrb.mxu3 %v631_v22  ;;  %v641_v20 = vld [vmem:[#allocation10 + $0x7e8] sm:$0xff]  ;;  %v496_v21 = vld [vmem:[#allocation10 + $0x360] sm:$0xff] }
  0xfe   : > { %1314 = vmatpush.msrb.mxu0 %v486_v23  ;;  %1333 = vmatpush.msrb.mxu1 %v622_v24  ;;  %v632_v22 = vld [vmem:[#allocation10 + $0x7a0] sm:$0xff]  ;;  %v497_v23 = vld [vmem:[#allocation10 + $0x368] sm:$0xff] }
  0xff   : > { %1354 = vmatpush.msrb.mxu2 %v487_v25  ;;  %1373 = vmatpush.msrb.mxu3 %v623_v26  ;;  %v633_v24 = vld [vmem:[#allocation10 + $0x7a8] sm:$0xff]  ;;  %v488_v25 = vld [vmem:[#allocation10 + $0x320] sm:$0xff] }
 0x100   : > { %1315 = vmatpush.msrb.mxu0 %v478_v27  ;;  %1334 = vmatpush.msrb.mxu1 %v614_v28  ;;  %v624_v26 = vld [vmem:[#allocation10 + $0x760] sm:$0xff]  ;;  %v489_v27 = vld [vmem:[#allocation10 + $0x328] sm:$0xff] }
 0x101   : > { %1355 = vmatpush.msrb.mxu2 %v479_v29  ;;  %1374 = vmatpush.msrb.mxu3 %v615_v30  ;;  %v625_v28 = vld [vmem:[#allocation10 + $0x768] sm:$0xff]  ;;  %v480_v29 = vld [vmem:[#allocation10 + $0x2e0] sm:$0xff] }
 0x102   : > { %1316 = vmatpush.msrb.mxu0 %v470_v31  ;;  %1335 = vmatpush.msrb.mxu1 %v606_v32  ;;  %v616_v30 = vld [vmem:[#allocation10 + $0x720] sm:$0xff]  ;;  %v481_v31 = vld [vmem:[#allocation10 + $0x2e8] sm:$0xff] }
 0x103   : > { %1356 = vmatpush.msrb.mxu2 %v471_v33  ;;  %1375 = vmatpush.msrb.mxu3 %v607_v34  ;;  %v617_v32 = vld [vmem:[#allocation10 + $0x728] sm:$0xff]  ;;  %v472_v33 = vld [vmem:[#allocation10 + $0x2a0] sm:$0xff] }
 0x104   : > { %1317 = vmatpush.msrb.mxu0 %v462_v35  ;;  %1336 = vmatpush.msrb.mxu1 %v598_v36  ;;  %v608_v34 = vld [vmem:[#allocation10 + $0x6e0] sm:$0xff]  ;;  %v473_v35 = vld [vmem:[#allocation10 + $0x2a8] sm:$0xff] }
 0x105   : > { %1357 = vmatpush.msrb.mxu2 %v463_v37  ;;  %1376 = vmatpush.msrb.mxu3 %v599_v38  ;;  %v609_v36 = vld [vmem:[#allocation10 + $0x6e8] sm:$0xff]  ;;  %v464_v37 = vld [vmem:[#allocation10 + $0x260] sm:$0xff] }
 0x106   : > { %1318 = vmatpush.msrb.mxu0 %v454_v39  ;;  %1337 = vmatpush.msrb.mxu1 %v590_v40  ;;  %v600_v38 = vld [vmem:[#allocation10 + $0x6a0] sm:$0xff]  ;;  %v465_v39 = vld [vmem:[#allocation10 + $0x268] sm:$0xff] }
 0x107   : > { %1358 = vmatpush.msrb.mxu2 %v455_v41  ;;  %1377 = vmatpush.msrb.mxu3 %v591_v42  ;;  %v601_v40 = vld [vmem:[#allocation10 + $0x6a8] sm:$0xff]  ;;  %v456_v41 = vld [vmem:[#allocation10 + $0x220] sm:$0xff] }
 0x108   : > { %1319 = vmatpush.msrb.mxu0 %v446_v43  ;;  %1338 = vmatpush.msrb.mxu1 %v582_v44  ;;  %v592_v42 = vld [vmem:[#allocation10 + $0x660] sm:$0xff]  ;;  %v457_v43 = vld [vmem:[#allocation10 + $0x228] sm:$0xff] }
 0x109   : > { %1359 = vmatpush.msrb.mxu2 %v447_v45  ;;  %1378 = vmatpush.msrb.mxu3 %v583_v46  ;;  %v593_v44 = vld [vmem:[#allocation10 + $0x668] sm:$0xff]  ;;  %v448_v45 = vld [vmem:[#allocation10 + $0x1e0] sm:$0xff] }
 0x10a   : > { %1320 = vmatpush.msrb.mxu0 %v438_v47  ;;  %1339 = vmatpush.msrb.mxu1 %v574_v48  ;;  %v584_v46 = vld [vmem:[#allocation10 + $0x620] sm:$0xff]  ;;  %v449_v47 = vld [vmem:[#allocation10 + $0x1e8] sm:$0xff] }
 0x10b   : > { %1360 = vmatpush.msrb.mxu2 %v439_v49  ;;  %1379 = vmatpush.msrb.mxu3 %v575_v50  ;;  %v585_v48 = vld [vmem:[#allocation10 + $0x628] sm:$0xff]  ;;  %v440_v49 = vld [vmem:[#allocation10 + $0x1a0] sm:$0xff] }
 0x10c   : > { %1321 = vmatpush.msrb.mxu0 %v430_v51  ;;  %1340 = vmatpush.msrb.mxu1 %v566_v52  ;;  %v576_v50 = vld [vmem:[#allocation10 + $0x5e0] sm:$0xff]  ;;  %v441_v51 = vld [vmem:[#allocation10 + $0x1a8] sm:$0xff] }
 0x10d   : > { %1361 = vmatpush.msrb.mxu2 %v431_v53  ;;  %1380 = vmatpush.msrb.mxu3 %v567_v54  ;;  %v577_v52 = vld [vmem:[#allocation10 + $0x5e8] sm:$0xff]  ;;  %v432_v53 = vld [vmem:[#allocation10 + $0x160] sm:$0xff] }
 0x10e   : > { %1322 = vmatpush.msrb.mxu0 %v422_v55  ;;  %1341 = vmatpush.msrb.mxu1 %v558_v56  ;;  %v568_v54 = vld [vmem:[#allocation10 + $0x5a0] sm:$0xff]  ;;  %v433_v55 = vld [vmem:[#allocation10 + $0x168] sm:$0xff] }
 0x10f   : > { %1362 = vmatpush.msrb.mxu2 %v423_v57  ;;  %1381 = vmatpush.msrb.mxu3 %v559_v58  ;;  %v569_v56 = vld [vmem:[#allocation10 + $0x5a8] sm:$0xff]  ;;  %v424_v57 = vld [vmem:[#allocation10 + $0x120] sm:$0xff] }
 0x110   : > { %1323 = vmatpush.msrb.mxu0 %v414_v59  ;;  %1342 = vmatpush.msrb.mxu1 %v550_v60  ;;  %v560_v58 = vld [vmem:[#allocation10 + $0x560] sm:$0xff]  ;;  %v425_v59 = vld [vmem:[#allocation10 + $0x128] sm:$0xff] }
 0x111   : > { %1363 = vmatpush.msrb.mxu2 %v415_v61  ;;  %1382 = vmatpush.msrb.mxu3 %v551_v62  ;;  %v561_v60 = vld [vmem:[#allocation10 + $0x568] sm:$0xff]  ;;  %v416_v61 = vld [vmem:[#allocation10 + $0xe0] sm:$0xff] }
 0x112   : > { %1324 = vmatpush.msrb.mxu0 %v406_v63  ;;  %1343 = vmatpush.msrb.mxu1 %v542_v0  ;;  %v552_v62 = vld [vmem:[#allocation10 + $0x520] sm:$0xff]  ;;  %v417_v63 = vld [vmem:[#allocation10 + $0xe8] sm:$0xff] }
 0x113   : > { %1364 = vmatpush.msrb.mxu2 %v407_v1  ;;  %1383 = vmatpush.msrb.mxu3 %v543_v4  ;;  %v553_v0 = vld [vmem:[#allocation10 + $0x528] sm:$0xff]  ;;  %v408_v1 = vld [vmem:[#allocation10 + $0xa0] sm:$0xff] }
 0x114   : > { %1325 = vmatpush.msrb.mxu0 %v398_v5  ;;  %1344 = vmatpush.msrb.mxu1 %v534_v6  ;;  %v544_v4 = vld [vmem:[#allocation10 + $0x4e0] sm:$0xff]  ;;  %v409_v5 = vld [vmem:[#allocation10 + $0xa8] sm:$0xff] }
 0x115   : > { %1365 = vmatpush.msrb.mxu2 %v399_v2  ;;  %1384 = vmatpush.msrb.mxu3 %v535_v7  ;;  %v545_v6 = vld [vmem:[#allocation10 + $0x4e8] sm:$0xff]  ;;  %v400_v2 = vld [vmem:[#allocation10 + $0x60] sm:$0xff] }
 0x116   : > { %1326 = vmatpush.msrb.mxu0 %v390_v8  ;;  %1345 = vmatpush.msrb.mxu1 %v526_v9  ;;  %v536_v7 = vld [vmem:[#allocation10 + $0x4a0] sm:$0xff]  ;;  %v401_v8 = vld [vmem:[#allocation10 + $0x68] sm:$0xff] }
 0x117   : > { %1366 = vmatpush.msrb.mxu2 %v391_v3  ;;  %1385 = vmatpush.msrb.mxu3 %v527_v11  ;;  %v537_v9 = vld [vmem:[#allocation10 + $0x4a8] sm:$0xff]  ;;  %v392_v3 = vld [vmem:[#allocation10 + $0x20] sm:$0xff] }
 0x118   : > { %1327 = vmatmul.f32.vlgmr.msrb.gmra.mxu0 %v2561_v10  ;;  %1367 = vmatmul.f32.vlgmr.msrb.gmra.mxu2 %v2561_v10  ;;  %v528_v11 = vld [vmem:[#allocation10 + $0x460] sm:$0xff] }
 0x119   : > { %1391 = vmatpush.msra.mxu0 %v512_v12  ;;  %1431 = vmatpush.msra.mxu2 %v513_v13  ;;  %v393_v12 = vld [vmem:[#allocation10 + $0x28] sm:$0xff] }
 0x11a   : > { %1346 = vmatpush.msrb.mxu1 %v518_v15  ;;  %1386 = vmatpush.msrb.mxu3 %v519_v16  ;;  %v529_v13 = vld [vmem:[#allocation10 + $0x468] sm:$0xff]  ;;  %v514_v15 = vld [vmem:[#allocation10 + $0x3f0] sm:$0xff]  ;;  %v515_v16 = vld [vmem:[#allocation10 + $0x3f8] sm:$0xff] }
 0x11b   : > { %1347 = vmatmul.f32.vlgmr.msrb.gmra.mxu1 %v2563_v14  ;;  %1387 = vmatmul.f32.vlgmr.msrb.gmra.mxu3 %v2563_v14 }
 0x11c   : > { %1392 = vmatpush.msra.mxu0 %v504_v17  ;;  %1411 = vmatpush.msra.mxu1 %v640_v18  ;;  %v520_v17 = vld [vmem:[#allocation10 + $0x420] sm:$0xff]  ;;  %v521_v18 = vld [vmem:[#allocation10 + $0x428] sm:$0xff] }
 0x11d   : > { %1432 = vmatpush.msra.mxu2 %v505_v19  ;;  %1451 = vmatpush.msra.mxu3 %v641_v20  ;;  %v506_v19 = vld [vmem:[#allocation10 + $0x3b0] sm:$0xff] }
 0x11e   : > { %1393 = vmatpush.msra.mxu0 %v496_v21  ;;  %1412 = vmatpush.msra.mxu1 %v632_v22  ;;  %v642_v20 = vld [vmem:[#allocation10 + $0x7f0] sm:$0xff]  ;;  %v507_v21 = vld [vmem:[#allocation10 + $0x3b8] sm:$0xff] }
 0x11f   : > { %1433 = vmatpush.msra.mxu2 %v497_v23  ;;  %1452 = vmatpush.msra.mxu3 %v633_v24  ;;  %v643_v22 = vld [vmem:[#allocation10 + $0x7f8] sm:$0xff]  ;;  %v498_v23 = vld [vmem:[#allocation10 + $0x370] sm:$0xff] }
 0x120   : > { %1394 = vmatpush.msra.mxu0 %v488_v25  ;;  %1413 = vmatpush.msra.mxu1 %v624_v26  ;;  %v634_v24 = vld [vmem:[#allocation10 + $0x7b0] sm:$0xff]  ;;  %v499_v25 = vld [vmem:[#allocation10 + $0x378] sm:$0xff] }
 0x121   : > { %1434 = vmatpush.msra.mxu2 %v489_v27  ;;  %1453 = vmatpush.msra.mxu3 %v625_v28  ;;  %v635_v26 = vld [vmem:[#allocation10 + $0x7b8] sm:$0xff]  ;;  %v2577_v27 = vpop.f32.mrf.mxu0  ;;  %v2579_v28 = vpop.f32.mrf.mxu1 }
 0x122   : > { %1395 = vmatpush.msra.mxu0 %v480_v29  ;;  %1414 = vmatpush.msra.mxu1 %v616_v30  ;;  %v490_v29 = vld [vmem:[#allocation10 + $0x330] sm:$0xff] }
 0x123   : > { %1435 = vmatpush.msra.mxu2 %v481_v31  ;;  %1454 = vmatpush.msra.mxu3 %v617_v32  ;;  %v626_v30 = vld [vmem:[#allocation10 + $0x770] sm:$0xff]  ;;  %v491_v31 = vld [vmem:[#allocation10 + $0x338] sm:$0xff] }
 0x124   : > { %1396 = vmatpush.msra.mxu0 %v472_v33  ;;  %1415 = vmatpush.msra.mxu1 %v608_v34  ;;  %v627_v32 = vld [vmem:[#allocation10 + $0x778] sm:$0xff]  ;;  %v482_v33 = vld [vmem:[#allocation10 + $0x2f0] sm:$0xff] }
 0x125   : > { %1436 = vmatpush.msra.mxu2 %v473_v35  ;;  %1455 = vmatpush.msra.mxu3 %v609_v36  ;;  %v618_v34 = vld [vmem:[#allocation10 + $0x730] sm:$0xff]  ;;  %v483_v35 = vld [vmem:[#allocation10 + $0x2f8] sm:$0xff] }
 0x126   : > { %1397 = vmatpush.msra.mxu0 %v464_v37  ;;  %1416 = vmatpush.msra.mxu1 %v600_v38  ;;  %v619_v36 = vld [vmem:[#allocation10 + $0x738] sm:$0xff]  ;;  %v474_v37 = vld [vmem:[#allocation10 + $0x2b0] sm:$0xff] }
 0x127   : > { %1437 = vmatpush.msra.mxu2 %v465_v39  ;;  %1456 = vmatpush.msra.mxu3 %v601_v40  ;;  %v610_v38 = vld [vmem:[#allocation10 + $0x6f0] sm:$0xff]  ;;  %v475_v39 = vld [vmem:[#allocation10 + $0x2b8] sm:$0xff] }
 0x128   : > { %1398 = vmatpush.msra.mxu0 %v456_v41  ;;  %1417 = vmatpush.msra.mxu1 %v592_v42  ;;  %v611_v40 = vld [vmem:[#allocation10 + $0x6f8] sm:$0xff]  ;;  %v2581_v41 = vpop.f32.mrf.mxu2  ;;  %v2583_v42 = vpop.f32.mrf.mxu3 }
 0x129   : > { %1438 = vmatpush.msra.mxu2 %v457_v43  ;;  %1457 = vmatpush.msra.mxu3 %v593_v44  ;;  %v466_v43 = vld [vmem:[#allocation10 + $0x270] sm:$0xff] }
 0x12a   : > { %1399 = vmatpush.msra.mxu0 %v448_v45  ;;  %1418 = vmatpush.msra.mxu1 %v584_v46  ;;  %v602_v44 = vld [vmem:[#allocation10 + $0x6b0] sm:$0xff]  ;;  %v467_v45 = vld [vmem:[#allocation10 + $0x278] sm:$0xff] }
 0x12b   : > { %1439 = vmatpush.msra.mxu2 %v449_v47  ;;  %1458 = vmatpush.msra.mxu3 %v585_v48  ;;  %v603_v46 = vld [vmem:[#allocation10 + $0x6b8] sm:$0xff] }
 0x12c   : > { %1400 = vmatpush.msra.mxu0 %v440_v49  ;;  %1419 = vmatpush.msra.mxu1 %v576_v50  ;;  %v458_v49 = vld [vmem:[#allocation10 + $0x230] sm:$0xff] }
 0x12d   : > { %1440 = vmatpush.msra.mxu2 %v441_v51  ;;  %1459 = vmatpush.msra.mxu3 %v577_v52  ;;  %v2585_v47 = vpop.f32.mrf.mxu0  ;;  %v2587_v48 = vpop.f32.mrf.mxu1  ;;  %v594_v50 = vld [vmem:[#allocation10 + $0x670] sm:$0xff]  ;;  %v459_v51 = vld [vmem:[#allocation10 + $0x238] sm:$0xff] }
 0x12e   : > { %1401 = vmatpush.msra.mxu0 %v432_v53  ;;  %1420 = vmatpush.msra.mxu1 %v568_v54  ;;  %v595_v52 = vld [vmem:[#allocation10 + $0x678] sm:$0xff]  ;;  %v450_v53 = vld [vmem:[#allocation10 + $0x1f0] sm:$0xff] }
 0x12f   : > { %1441 = vmatpush.msra.mxu2 %v433_v55  ;;  %1460 = vmatpush.msra.mxu3 %v569_v56  ;;  %v586_v54 = vld [vmem:[#allocation10 + $0x630] sm:$0xff]  ;;  %v451_v55 = vld [vmem:[#allocation10 + $0x1f8] sm:$0xff] }
 0x130   : > { %1402 = vmatpush.msra.mxu0 %v424_v57  ;;  %1421 = vmatpush.msra.mxu1 %v560_v58  ;;  %v587_v56 = vld [vmem:[#allocation10 + $0x638] sm:$0xff]  ;;  %v442_v57 = vld [vmem:[#allocation10 + $0x1b0] sm:$0xff] }
 0x131   : > { %1442 = vmatpush.msra.mxu2 %v425_v59  ;;  %1461 = vmatpush.msra.mxu3 %v561_v60  ;;  %v578_v58 = vld [vmem:[#allocation10 + $0x5f0] sm:$0xff]  ;;  %v443_v59 = vld [vmem:[#allocation10 + $0x1b8] sm:$0xff] }
 0x132   : > { %1403 = vmatpush.msra.mxu0 %v416_v61  ;;  %1422 = vmatpush.msra.mxu1 %v552_v62  ;;  %v579_v60 = vld [vmem:[#allocation10 + $0x5f8] sm:$0xff]  ;;  %v434_v61 = vld [vmem:[#allocation10 + $0x170] sm:$0xff] }
 0x133   : > { %1443 = vmatpush.msra.mxu2 %v417_v63  ;;  %1462 = vmatpush.msra.mxu3 %v553_v0  ;;  %v570_v62 = vld [vmem:[#allocation10 + $0x5b0] sm:$0xff]  ;;  %v435_v63 = vld [vmem:[#allocation10 + $0x178] sm:$0xff] }
 0x134   : > { %1404 = vmatpush.msra.mxu0 %v408_v1  ;;  %1423 = vmatpush.msra.mxu1 %v544_v4  ;;  %v571_v0 = vld [vmem:[#allocation10 + $0x5b8] sm:$0xff]  ;;  %v2589_v1 = vpop.f32.mrf.mxu2 }
 0x135   : > { %1444 = vmatpush.msra.mxu2 %v409_v5  ;;  %1463 = vmatpush.msra.mxu3 %v545_v6  ;;  %v426_v5 = vld [vmem:[#allocation10 + $0x130] sm:$0xff] }
 0x136   : > { %1405 = vmatpush.msra.mxu0 %v400_v2  ;;  %1424 = vmatpush.msra.mxu1 %v536_v7  ;;  %v562_v6 = vld [vmem:[#allocation10 + $0x570] sm:$0xff] }
 0x137   : > { %1445 = vmatpush.msra.mxu2 %v401_v8  ;;  %1464 = vmatpush.msra.mxu3 %v537_v9  ;;  %v2591_v4 = vpop.f32.mrf.mxu3  ;;  %v427_v8 = vld [vmem:[#allocation10 + $0x138] sm:$0xff] }
 0x138   : > { %1406 = vmatpush.msra.mxu0 %v392_v3  ;;  %1425 = vmatpush.msra.mxu1 %v528_v11  ;;  %v563_v9 = vld [vmem:[#allocation10 + $0x578] sm:$0xff]  ;;  %v418_v11 = vld [vmem:[#allocation10 + $0xf0] sm:$0xff] }
 0x139   : > { %1446 = vmatpush.msra.mxu2 %v393_v12  ;;  %1465 = vmatpush.msra.mxu3 %v529_v13  ;;  %v554_v12 = vld [vmem:[#allocation10 + $0x530] sm:$0xff]  ;;  %v419_v13 = vld [vmem:[#allocation10 + $0xf8] sm:$0xff] }
 0x13a   : > { %1407 = vmatmul.f32.vlgmr.msra.gmra.mxu0 %v2561_v10  ;;  %1447 = vmatmul.f32.vlgmr.msra.gmra.mxu2 %v2561_v10 }
 0x13b   : > { %1471 = vmatpush.msrb.mxu0 %v514_v15  ;;  %1511 = vmatpush.msrb.mxu2 %v515_v16  ;;  %v555_v15 = vld [vmem:[#allocation10 + $0x538] sm:$0xff]  ;;  %v410_v16 = vld [vmem:[#allocation10 + $0xb0] sm:$0xff] }
 0x13c   : > { %1426 = vmatpush.msra.mxu1 %v520_v17  ;;  %1466 = vmatpush.msra.mxu3 %v521_v18  ;;  %v546_v17 = vld [vmem:[#allocation10 + $0x4f0] sm:$0xff]  ;;  %v411_v18 = vld [vmem:[#allocation10 + $0xb8] sm:$0xff] }
 0x13d   : > { %1427 = vmatmul.f32.vlgmr.msra.gmra.mxu1 %v2563_v14  ;;  %1467 = vmatmul.f32.vlgmr.msra.gmra.mxu3 %v2563_v14 }
 0x13e   : > { %1472 = vmatpush.msrb.mxu0 %v506_v19  ;;  %1491 = vmatpush.msrb.mxu1 %v642_v20  ;;  %v547_v19 = vld [vmem:[#allocation10 + $0x4f8] sm:$0xff]  ;;  %v402_v20 = vld [vmem:[#allocation10 + $0x70] sm:$0xff] }
 0x13f   : > { %1512 = vmatpush.msrb.mxu2 %v507_v21  ;;  %1531 = vmatpush.msrb.mxu3 %v643_v22  ;;  %v538_v21 = vld [vmem:[#allocation10 + $0x4b0] sm:$0xff]  ;;  %v403_v22 = vld [vmem:[#allocation10 + $0x78] sm:$0xff] }
 0x140   : > { %1473 = vmatpush.msrb.mxu0 %v498_v23  ;;  %1492 = vmatpush.msrb.mxu1 %v634_v24  ;;  %v539_v23 = vld [vmem:[#allocation10 + $0x4b8] sm:$0xff]  ;;  %v394_v24 = vld [vmem:[#allocation10 + $0x30] sm:$0xff] }
 0x141   : > { %1513 = vmatpush.msrb.mxu2 %v499_v25  ;;  %1532 = vmatpush.msrb.mxu3 %v635_v26  ;;  %v530_v25 = vld [vmem:[#allocation10 + $0x470] sm:$0xff]  ;;  %v395_v26 = vld [vmem:[#allocation10 + $0x38] sm:$0xff] }
 0x142   : > { %1474 = vmatpush.msrb.mxu0 %v490_v29  ;;  %1493 = vmatpush.msrb.mxu1 %v626_v30  ;;  %v531_v29 = vld [vmem:[#allocation10 + $0x478] sm:$0xff] }
 0x143   : > { %1514 = vmatpush.msrb.mxu2 %v491_v31  ;;  %1533 = vmatpush.msrb.mxu3 %v627_v32  ;;  %v522_v32 = vld [vmem:[#allocation10 + $0x430] sm:$0xff] }
 0x144   : > { %1475 = vmatpush.msrb.mxu0 %v482_v33  ;;  %1494 = vmatpush.msrb.mxu1 %v618_v34  ;;  %v523_v33 = vld [vmem:[#allocation10 + $0x438] sm:$0xff] }
 0x145   : > { %1515 = vmatpush.msrb.mxu2 %v483_v35  ;;  %1534 = vmatpush.msrb.mxu3 %v619_v36 }
 0x146   : > { %1476 = vmatpush.msrb.mxu0 %v474_v37  ;;  %1495 = vmatpush.msrb.mxu1 %v610_v38 }
 0x147   : > { %1516 = vmatpush.msrb.mxu2 %v475_v39  ;;  %1535 = vmatpush.msrb.mxu3 %v611_v40  ;;  %v944_v39 = vadd.f32 %v2579_v28, %v2577_v27  ;;  %v1709_v27 = vld [vmem:[#allocation13 + $0x70] sm:$0xff] }
 0x148   : > { %1477 = vmatpush.msrb.mxu0 %v466_v43  ;;  %1496 = vmatpush.msrb.mxu1 %v602_v44 }
 0x149   : > { %1517 = vmatpush.msrb.mxu2 %v467_v45  ;;  %1536 = vmatpush.msrb.mxu3 %v603_v46 }
 0x14a   : > { %1478 = vmatpush.msrb.mxu0 %v458_v49  ;;  %1497 = vmatpush.msrb.mxu1 %v594_v50  ;;  %v984_v49 = vadd.f32 %v2583_v42, %v2581_v41  ;;  %v1706_v41 = vld [vmem:[#allocation13 + $0x58] sm:$0xff] }
 0x14b   : > { %1518 = vmatpush.msrb.mxu2 %v459_v51  ;;  %1537 = vmatpush.msrb.mxu3 %v595_v52 }
 0x14c   : > { %1479 = vmatpush.msrb.mxu0 %v450_v53  ;;  %1498 = vmatpush.msrb.mxu1 %v586_v54  ;;  %v1710_v54 = vld [vmem:[#allocation13 + $0x78] sm:$0xff] }
 0x14d   : > { %1519 = vmatpush.msrb.mxu2 %v451_v55  ;;  %1538 = vmatpush.msrb.mxu3 %v587_v56 }
 0x14e   : > { %1480 = vmatpush.msrb.mxu0 %v442_v57  ;;  %1499 = vmatpush.msrb.mxu1 %v578_v58  ;;  %v1708_v57 = vld [vmem:[#allocation13 + $0x68] sm:$0xff]  ;;  %v1707_v58 = vld [vmem:[#allocation13 + $0x60] sm:$0xff] }
 0x14f   : > { %1520 = vmatpush.msrb.mxu2 %v443_v59  ;;  %1539 = vmatpush.msrb.mxu3 %v579_v60  ;;  %v1083_v2 = vpop.f32.mrf.mxu0  ;;  %v1103_v7 = vpop.f32.mrf.mxu1  ;;  %v1705_v60 = vld [vmem:[#allocation13 + $0x50] sm:$0xff] }
 0x150   : > { %1481 = vmatpush.msrb.mxu0 %v434_v61  ;;  %1500 = vmatpush.msrb.mxu1 %v570_v62  ;;  %v2593_v3 = vadd.f32 %v1103_v7, %v1083_v2  ;;  %v1704_v62 = vld [vmem:[#allocation13 + $0x48] sm:$0xff]  ;;  %v1702_v2 = vld [vmem:[#allocation13 + $0x38] sm:$0xff] }
 0x151   : > { %1521 = vmatpush.msrb.mxu2 %v435_v63  ;;  %1540 = vmatpush.msrb.mxu3 %v571_v0  ;;  %v1703_v0 = vld [vmem:[#allocation13 + $0x40] sm:$0xff] }
 0x152   : > { %1482 = vmatpush.msrb.mxu0 %v426_v5  ;;  %1501 = vmatpush.msrb.mxu1 %v562_v6 }
 0x153   : > { %1522 = vmatpush.msrb.mxu2 %v427_v8  ;;  %1541 = vmatpush.msrb.mxu3 %v563_v9  ;;  %v1701_v9 = vld [vmem:[#allocation13 + $0x30] sm:$0xff] }
 0x154   : > { %1483 = vmatpush.msrb.mxu0 %v418_v11  ;;  %1502 = vmatpush.msrb.mxu1 %v554_v12  ;;  %v1700_v12 = vld [vmem:[#allocation13 + $0x28] sm:$0xff] }
 0x155   : > { %1523 = vmatpush.msrb.mxu2 %v419_v13  ;;  %1542 = vmatpush.msrb.mxu3 %v555_v15 }
 0x156   : > { %1484 = vmatpush.msrb.mxu0 %v410_v16  ;;  %1503 = vmatpush.msrb.mxu1 %v546_v17  ;;  %v1123_v30 = vpop.f32.mrf.mxu2  ;;  %v1699_v17 = vld [vmem:[#allocation13 + $0x20] sm:$0xff] }
 0x157   : > { %1524 = vmatpush.msrb.mxu2 %v411_v18  ;;  %1543 = vmatpush.msrb.mxu3 %v547_v19 }
 0x158   : > { %1485 = vmatpush.msrb.mxu0 %v402_v20  ;;  %1504 = vmatpush.msrb.mxu1 %v538_v21  ;;  %v1024_v20 = vadd.f32 %v2587_v48, %v2585_v47 }
 0x159   : > { %1525 = vmatpush.msrb.mxu2 %v403_v22  ;;  %1544 = vmatpush.msrb.mxu3 %v539_v23  ;;  %v1143_v31 = vpop.f32.mrf.mxu3  ;;  %v1698_v23 = vld [vmem:[#allocation13 + $0x18] sm:$0xff] }
 0x15a   : > { %1486 = vmatpush.msrb.mxu0 %v394_v24  ;;  %1505 = vmatpush.msrb.mxu1 %v530_v25  ;;  %v2595_v34 = vadd.f32 %v1143_v31, %v1123_v30  ;;  %v1697_v30 = vld [vmem:[#allocation13 + $0x10] sm:$0xff] }
 0x15b   : > { %1526 = vmatpush.msrb.mxu2 %v395_v26  ;;  %1545 = vmatpush.msrb.mxu3 %v531_v29 }
 0x15c   : > { %1487 = vmatmul.f32.vlgmr.msrb.gmra.mxu0 %v2561_v10  ;;  %1527 = vmatmul.f32.vlgmr.msrb.gmra.mxu2 %v2561_v10 }
 0x15d   : > { %1506 = vmatpush.msrb.mxu1 %v522_v32  ;;  %1546 = vmatpush.msrb.mxu3 %v523_v33 }
 0x15e   : > { %1507 = vmatmul.f32.vlgmr.msrb.gmra.mxu1 %v2563_v14  ;;  %1547 = vmatmul.f32.vlgmr.msrb.gmra.mxu3 %v2563_v14 }
 0x15f   : > { %1728 = vmatpush.msra.mxu0 %v1710_v54 }
 0x161   : > { %1729 = vmatpush.msra.mxu0 %v1709_v27 }
 0x163   : > { %1730 = vmatpush.msra.mxu0 %v1708_v57 }
 0x165   : > { %1731 = vmatpush.msra.mxu0 %v1707_v58 }
 0x167   : > { %1732 = vmatpush.msra.mxu0 %v1706_v41 }
 0x169   : > { %v1163_v35 = vpop.f32.mrf.mxu0  ;;  %1733 = vmatpush.msra.mxu0 %v1705_v60 }
 0x16b   : > { %1734 = vmatpush.msra.mxu0 %v1704_v62 }
 0x16c   : > { %v1183_v36 = vpop.f32.mrf.mxu1 }
 0x16d   : > { %v2601_v37 = vadd.f32 %v1183_v36, %v1163_v35  ;;  %1735 = vmatpush.msra.mxu0 %v1703_v0  ;;  %v1696_v35 = vld [vmem:[#allocation13 + $0x8] sm:$0xff]  ;;  %v1064_v36 = vadd.f32 %v2591_v4, %v2589_v1 }
 0x16f   : > { %v1203_v38 = vpop.f32.mrf.mxu2  ;;  %1736 = vmatpush.msra.mxu0 %v1702_v2 }
 0x171   : > { %1737 = vmatpush.msra.mxu0 %v1701_v9 }
 0x172   : > { %v1223_v40 = vpop.f32.mrf.mxu3 }
 0x173   : > { %v2605_v43 = vadd.f32 %v1223_v40, %v1203_v38  ;;  %v1248_v44 = vpop.f32.mrf.mxu0  ;;  %1738 = vmatpush.msra.mxu0 %v1700_v12 }
 0x174   : > { %v1249_v45 = vadd.f32 %v1248_v44, %v944_v39 }
 0x175   : > { %1739 = vmatpush.msra.mxu0 %v1699_v17 }
 0x176   : > { %v1268_v10 = vpop.f32.mrf.mxu1 }
 0x177   : > { %v1269_v46 = vadd.f32 %v1268_v10, %v1249_v45  ;;  %1740 = vmatpush.msra.mxu0 %v1698_v23  ;;  %v1695_v45 = vld [vmem:[#allocation13] sm:$0xff] }
 0x179   : > { %v1938_v50 = vmul.f32 -1.442695, %v1269_v46  ;;  %v1288_v14 = vpop.f32.mrf.mxu2  ;;  %1741 = vmatpush.msra.mxu0 %v1697_v30 }
 0x17a   : > { %v1289_v51 = vadd.f32 %v1288_v14, %v984_v49  ;;  %v1667_v14 = vld [vmem:[#allocation3] sm:$0x1] }
 0x17b   : > { %2054 = vpow2.f32 %v1938_v50  ;;  %1742 = vmatpush.msra.mxu0 %v1696_v35 }
 0x17c   : > { %v1308_v52 = vpop.f32.mrf.mxu3 }
 0x17d   : > { %v1309_v53 = vadd.f32 %v1308_v52, %v1289_v51  ;;  %1743 = vmatpush.msra.mxu0 %v1695_v45 }
 0x17f   : > { %v1939_v55 = vmul.f32 -1.442695, %v1309_v53 }
 0x181   : > { %v2055_v28 = vpop.eup %2054  ;;  %2056 = vpow2.f32 %v1939_v55 }
 0x182   : > { %v1554_v56 = vadd.f32 1.0, %v2055_v28 }
 0x184   : > { %2058 = vrcp.f32 %v1554_v56  ;;  %v1566_v6 = vand.u32 2147483648, %v1554_v56  ;;  %v1564_v8 = vand.u32 2147483647, %v1554_v56  ;;  %vm1560_vm2 = vweird.f32 %v1554_v56 }
 0x186   : > { %v1567_v16 = vor.u32 1.1754944e-38, %v1566_v6  ;;  %vm1565_vm4 = vcmp.eq.f32.partialorder %v1564_v8, 8.507059e+37  ;;  %v1725_v8 = vld [vmem:[#allocation13 + $0xf0] sm:$0xff] }
 0x187   : > { %v2057_v42 = vpop.eup %2056 }
 0x188   : > { %v1573_v59 = vadd.f32 1.0, %v2057_v42 }
 0x18a   : > { %v2059_v61 = vpop.eup %2058  ;;  %2060 = vrcp.f32 %v1573_v59  ;;  %v1585_v22 = vand.u32 2147483648, %v1573_v59  ;;  %v1583_v26 = vand.u32 2147483647, %v1573_v59  ;;  %vm1579_vm6 = vweird.f32 %v1573_v59 }
 0x18b   : > { %v1556_v63 = vmul.f32 %v2059_v61, %v1554_v56  ;;  %vm1561_vm1 = vweird.f32 %v2059_v61 }
 0x18c   : > { %vm1562_vm3 = vmor %vm1560_vm2, %vm1561_vm1  ;;  %v1586_v33 = vor.u32 1.1754944e-38, %v1585_v22  ;;  %vm1584_vm8 = vcmp.eq.f32.partialorder %v1583_v26, 8.507059e+37  ;;  %v1718_v22 = vld [vmem:[#allocation13 + $0xb8] sm:$0xff]  ;;  %v1716_v26 = vld [vmem:[#allocation13 + $0xa8] sm:$0xff] }
 0x18d   : > { %v1557_v5 = vsub.f32 1.0, %v1556_v63 }
 0x18f   : > { %v1558_v7 = vmul.f32 %v2059_v61, %v1557_v5  ;;  %v1726_v5 = vld [vmem:[#allocation13 + $0xf8] sm:$0xff] }
 0x190   : > { %v2061_v11 = vpop.eup %2060  ;;  %1748 = vmatpush.msra.mxu1 %v1726_v5 }
 0x191   : > { %v1575_v13 = vmul.f32 %v2061_v11, %v1573_v59  ;;  %v1559_v15 = vadd.f32 %v2059_v61, %v1558_v7  ;;  %vm1580_vm5 = vweird.f32 %v2061_v11 }
 0x192   : > { %vm1581_vm7 = vmor %vm1579_vm6, %vm1580_vm5  ;;  %1749 = vmatpush.msra.mxu1 %v1725_v8  ;;  %vm1681_vm5 = vcmask 1040384  }
 0x193   : > { %v1576_v18 = vsub.f32 1.0, %v1575_v13  ;;  %v1563_v19 = vsel %vm1562_vm3, %v2059_v61, %v1559_v15  ;;  %v1722_v15 = vld [vmem:[#allocation13 + $0xd8] sm:$0xff] }
 0x194   : > { %v1568_v21 = vsel %vm1565_vm4, %v1567_v16, %v1563_v19  ;;  %v1720_v19 = vld [vmem:[#allocation13 + $0xc8] sm:$0xff] }
 0x195   : > { %v1328_v24 = vpop.f32.mrf.mxu0  ;;  %v1577_v25 = vmul.f32 %v2061_v11, %v1576_v18  ;;  %1771 = vst [vmem:[%s2536_s9 + $0x3] sm:$0x1] %v1568_v21  ;;  %v1669_v1 = vmul.f32 %v1667_v14, %v1568_v21  ;;  %v1721_v18 = vld [vmem:[#allocation13 + $0xd0] sm:$0xff] }
 0x196   : > { %v1329_v29 = vadd.f32 %v1328_v24, %v1024_v20  ;;  %v1717_v24 = vld [vmem:[#allocation13 + $0xb0] sm:$0xff] }
 0x197   : > { %v1578_v31 = vadd.f32 %v2061_v11, %v1577_v25 }
 0x198   : > { %v1348_v32 = vpop.f32.mrf.mxu1 }
 0x199   : > { %v1349_v47 = vadd.f32 %v1348_v32, %v1329_v29  ;;  %v1582_v48 = vsel %vm1581_vm7, %v2061_v11, %v1578_v31  ;;  %v1724_v11 = vld [vmem:[#allocation13 + $0xe8] sm:$0xff]  ;;  %v1715_v31 = vld [vmem:[#allocation13 + $0xa0] sm:$0xff]  ;;  %v1714_v32 = vld [vmem:[#allocation13 + $0x98] sm:$0xff] }
 0x19a   : > { %v1587_v38 = vsel %vm1584_vm8, %v1586_v33, %v1582_v48  ;;  %1750 = vmatpush.msra.mxu1 %v1724_v11  ;;  %v1713_v48 = vld [vmem:[#allocation13 + $0x90] sm:$0xff] }
 0x19b   : > { %v1940_v39 = vmul.f32 -1.442695, %v1349_v47  ;;  %v1368_v40 = vpop.f32.mrf.mxu2  ;;  %1772 = vst [vmem:[%s2536_s9 + $0x4] sm:$0x1] %v1587_v38 }
 0x19c   : > { %v1369_v44 = vadd.f32 %v1368_v40, %v1064_v36  ;;  %v1712_v40 = vld [vmem:[#allocation13 + $0x88] sm:$0xff] }
 0x19d   : > { %2062 = vpow2.f32 %v1940_v39 }
 0x19e   : > { %v1388_v10 = vpop.f32.mrf.mxu3 }
 0x19f   : > { %v1389_v46 = vadd.f32 %v1388_v10, %v1369_v44 }
 0x1a1   : > { %2064 = vtanh.f32 %v1389_v46 }
 0x1a3   : > { %v2063_v49 = vpop.eup %2062 }
 0x1a4   : > { %v1592_v50 = vadd.f32 1.0, %v2063_v49  ;;  %v1711_v49 = vld [vmem:[#allocation13 + $0x80] sm:$0xff] }
 0x1a6   : > { %2066 = vrcp.f32 %v1592_v50  ;;  %v1604_v27 = vand.u32 2147483648, %v1592_v50  ;;  %v1602_v56 = vand.u32 2147483647, %v1592_v50  ;;  %vm1598_vm10 = vweird.f32 %v1592_v50 }
 0x1a7   : > { %v2065_v51 = vpop.eup %2064 }
 0x1a8   : > { %v1670_v4 = vmul.f32 %v2065_v51, %v1587_v38  ;;  %1774 = vst [vmem:[%s2536_s9 + $0x6] sm:$0x1] %v2065_v51  ;;  %v1605_v58 = vor.u32 1.1754944e-38, %v1604_v27  ;;  %vm1603_vm12 = vcmp.eq.f32.partialorder %v1602_v56, 8.507059e+37 }
 0x1aa   : > { %v2616_v52 = vadd.f32 %v1670_v4, %v1669_v1 }
 0x1ac   : > { %v2067_v53 = vpop.eup %2066  ;;  %1769 = vst [vmem:[%s2536_s9 + $0x1] sm:$0x1] %v2616_v52  ;;  %2068 = vtanh.f32 %v2616_v52 }
 0x1ad   : > { %v1594_v54 = vmul.f32 %v2067_v53, %v1592_v50  ;;  %vm1599_vm9 = vweird.f32 %v2067_v53 }
 0x1ae   : > { %vm1600_vm11 = vmor %vm1598_vm10, %vm1599_vm9 }
 0x1af   : > { %v1595_v55 = vsub.f32 1.0, %v1594_v54 }
 0x1b1   : > { %v1596_v28 = vmul.f32 %v2067_v53, %v1595_v55 }
 0x1b2   : > { %v2621_v42 = vpop.eup %2068 }
 0x1b3   : > { %v1597_v57 = vadd.f32 %v2067_v53, %v1596_v28 }
 0x1b5   : > { %v1601_v41 = vsel %vm1600_vm11, %v2067_v53, %v1597_v57 }
 0x1b6   : > { %v1606_v59 = vsel %vm1603_vm12, %v1605_v58, %v1601_v41 }
 0x1b7   : > { %v1408_v60 = vpop.f32.mrf.mxu0  ;;  %v2624_v61 = vmul.f32 %v2621_v42, %v1606_v59  ;;  %1773 = vst [vmem:[%s2536_s9 + $0x5] sm:$0x1] %v1606_v59 }
 0x1b8   : > { %v1409_v62 = vadd.f32 %v1408_v60, %v2593_v3  ;;  %v1723_v3 = vld [vmem:[#allocation13 + $0xe0] sm:$0xff] }
 0x1b9   : > { %1744 = vmatmul.f32.vlgmr.msra.gmra.mxu0 %v2624_v61  ;;  %1768 = vst [vmem:[%s2536_s9] sm:$0x1] %v2624_v61  ;;  %1751 = vmatpush.msra.mxu1 %v1723_v3 }
 0x1ba   : > { %v1428_v63 = vpop.f32.mrf.mxu1 }
 0x1bb   : > { %v1429_v0 = vadd.f32 %v1428_v63, %v1409_v62  ;;  %1752 = vmatpush.msra.mxu1 %v1722_v15  ;;  %v1668_v62 = vld [vmem:[#allocation3 + $0x1] sm:$0x1] }
 0x1bd   : > { %v1941_v6 = vmul.f32 -1.442695, %v1429_v0  ;;  %v1448_v2 = vpop.f32.mrf.mxu2  ;;  %1753 = vmatpush.msra.mxu1 %v1721_v18 }
 0x1be   : > { %v1449_v7 = vadd.f32 %v1448_v2, %v2595_v34  ;;  %v1719_v34 = vld [vmem:[#allocation13 + $0xc0] sm:$0xff] }
 0x1bf   : > { %2070 = vpow2.f32 %v1941_v6  ;;  %1754 = vmatpush.msra.mxu1 %v1720_v19  ;;  %v1684_v6 = vlaneseq }
 0x1c0   : > { %v1468_v9 = vpop.f32.mrf.mxu3 }
 0x1c1   : > { %v1469_v12 = vadd.f32 %v1468_v9, %v1449_v7  ;;  %1755 = vmatpush.msra.mxu1 %v1719_v34  ;;  %vm2637_vm6 = vcmp.lt.s32.totalorder %v1684_v6, 256 }
 0x1c3   : > { %v1942_v13 = vmul.f32 -1.442695, %v1469_v12  ;;  %1756 = vmatpush.msra.mxu1 %v1718_v22 }
 0x1c5   : > { %v2071_v16 = vpop.eup %2070  ;;  %2072 = vpow2.f32 %v1942_v13  ;;  %1757 = vmatpush.msra.mxu1 %v1717_v24 }
 0x1c6   : > { %v1612_v17 = vadd.f32 1.0, %v2071_v16 }
 0x1c7   : > { %1758 = vmatpush.msra.mxu1 %v1716_v26 }
 0x1c8   : > { %2074 = vrcp.f32 %v1612_v17  ;;  %v1624_v30 = vand.u32 2147483648, %v1612_v17  ;;  %v1622_v35 = vand.u32 2147483647, %v1612_v17  ;;  %vm1618_vm14 = vweird.f32 %v1612_v17 }
 0x1c9   : > { %1759 = vmatpush.msra.mxu1 %v1715_v31 }
 0x1ca   : > { %v1625_v39 = vor.u32 1.1754944e-38, %v1624_v30  ;;  %vm1623_vm0 = vcmp.eq.f32.partialorder %v1622_v35, 8.507059e+37 }
 0x1cb   : > { %v2073_v20 = vpop.eup %2072  ;;  %1760 = vmatpush.msra.mxu1 %v1714_v32 }
 0x1cc   : > { %v1631_v21 = vadd.f32 1.0, %v2073_v20 }
 0x1cd   : > { %1761 = vmatpush.msra.mxu1 %v1713_v48 }
 0x1ce   : > { %v2075_v23 = vpop.eup %2074  ;;  %2076 = vrcp.f32 %v1631_v21  ;;  %v1643_v46 = vand.u32 2147483648, %v1631_v21  ;;  %v1641_v51 = vand.u32 2147483647, %v1631_v21  ;;  %vm1637_vm2 = vweird.f32 %v1631_v21 }
 0x1cf   : > { %v1614_v25 = vmul.f32 %v2075_v23, %v1612_v17  ;;  %vm1619_vm13 = vweird.f32 %v2075_v23  ;;  %1762 = vmatpush.msra.mxu1 %v1712_v40 }
 0x1d0   : > { %vm1620_vm15 = vmor %vm1618_vm14, %vm1619_vm13  ;;  %v1644_v55 = vor.u32 1.1754944e-38, %v1643_v46  ;;  %vm1642_vm4 = vcmp.eq.f32.partialorder %v1641_v51, 8.507059e+37 }
 0x1d1   : > { %v1615_v29 = vsub.f32 1.0, %v1614_v25  ;;  %1763 = vmatpush.msra.mxu1 %v1711_v49 }
 0x1d3   : > { %v1616_v33 = vmul.f32 %v2075_v23, %v1615_v29 }
 0x1d4   : > { %v2077_v47 = vpop.eup %2076 }
 0x1d5   : > { %v1633_v36 = vmul.f32 %v2077_v47, %v1631_v21  ;;  %v1617_v38 = vadd.f32 %v2075_v23, %v1616_v33  ;;  %vm1638_vm1 = vweird.f32 %v2077_v47  ;;  %v2353_v21 = vmov 0.0  }
 0x1d6   : > { %vm1639_vm3 = vmor %vm1637_vm2, %vm1638_vm1  ;;  %1781 = vst [vmem:[%s2536_s9 + $0xd] sm:$0x7] %v2353_v21 }
 0x1d7   : > { %v1634_v44 = vsub.f32 1.0, %v1633_v36  ;;  %v1621_v45 = vsel %vm1620_vm15, %v2075_v23, %v1617_v38 }
 0x1d8   : > { %v1626_v10 = vsel %vm1623_vm0, %v1625_v39, %v1621_v45 }
 0x1d9   : > { %v1488_v50 = vpop.f32.mrf.mxu0  ;;  %v1635_v14 = vmul.f32 %v2077_v47, %v1634_v44  ;;  %1777 = vst [vmem:[%s2536_s9 + $0x9] sm:$0x1] %v1626_v10  ;;  %v1674_v0 = vmul.f32 %v1668_v62, %v1626_v10 }
 0x1da   : > { %v1489_v1 = vadd.f32 %v1488_v50, %v2601_v37 }
 0x1db   : > { %v1508_v4 = vpop.f32.mrf.mxu1  ;;  %v1636_v53 = vadd.f32 %v2077_v47, %v1635_v14 }
 0x1dc   : > { %v1509_v54 = vadd.f32 %v1508_v4, %v1489_v1 }
 0x1dd   : > { %v1640_v27 = vsel %vm1639_vm3, %v2077_v47, %v1636_v53 }
 0x1de   : > { %v1943_v28 = vmul.f32 -1.442695, %v1509_v54  ;;  %v1645_v56 = vsel %vm1642_vm4, %v1644_v55, %v1640_v27 }
 0x1df   : > { %v1528_v57 = vpop.f32.mrf.mxu2  ;;  %1778 = vst [vmem:[%s2536_s9 + $0xa] sm:$0x1] %v1645_v56 }
 0x1e0   : > { %2078 = vpow2.f32 %v1943_v28  ;;  %v1529_v58 = vadd.f32 %v1528_v57, %v2605_v43 }
 0x1e1   : > { %v1548_v41 = vpop.f32.mrf.mxu3 }
 0x1e2   : > { %v1549_v59 = vadd.f32 %v1548_v41, %v1529_v58 }
 0x1e4   : > { %2080 = vtanh.f32 %v1549_v59 }
 0x1e6   : > { %v2079_v37 = vpop.eup %2078 }
 0x1e7   : > { %v1650_v60 = vadd.f32 1.0, %v2079_v37 }
 0x1e9   : > { %2082 = vrcp.f32 %v1650_v60  ;;  %v1662_v3 = vand.u32 2147483648, %v1650_v60  ;;  %v1660_v15 = vand.u32 2147483647, %v1650_v60  ;;  %vm1656_vm8 = vweird.f32 %v1650_v60 }
 0x1ea   : > { %v2081_v63 = vpop.eup %2080 }
 0x1eb   : > { %v1675_v5 = vmul.f32 %v2081_v63, %v1645_v56  ;;  %1780 = vst [vmem:[%s2536_s9 + $0xc] sm:$0x1] %v2081_v63  ;;  %v1663_v17 = vor.u32 1.1754944e-38, %v1662_v3  ;;  %vm1661_vm10 = vcmp.eq.f32.partialorder %v1660_v15, 8.507059e+37 }
 0x1ed   : > { %v1676_v2 = vadd.f32 %v1675_v5, %v1674_v0 }
 0x1ef   : > { %v2083_v7 = vpop.eup %2082  ;;  %v1680_v8 = vrot.slane %v1676_v2, 7  ;;  %1776 = vst [vmem:[%s2536_s9 + $0x8] sm:$0x1] %v1676_v2 }
 0x1f0   : > { %v1652_v43 = vmul.f32 %v2083_v7, %v1650_v60  ;;  %vm1657_vm7 = vweird.f32 %v2083_v7 }
 0x1f1   : > { %v1682_v11 = vsel %vm1681_vm5, %v2616_v52, %v1680_v8  ;;  %vm1658_vm9 = vmor %vm1656_vm8, %vm1657_vm7 }
 0x1f2   : > { %v1653_v12 = vsub.f32 1.0, %v1652_v43  ;;  %1688 = vst.msk [vmem:[#allocation3] sm:$0x3] %vm2637_vm6, %v1682_v11 }
 0x1f4   : > { %v1654_v13 = vmul.f32 %v2083_v7, %v1653_v12 }
 0x1f6   : > { %v1655_v16 = vadd.f32 %v2083_v7, %v1654_v13 }
 0x1f8   : > { %v1659_v18 = vsel %vm1658_vm9, %v2083_v7, %v1655_v16 }
 0x1f9   : > { %v1664_v19 = vsel %vm1661_vm10, %v1663_v17, %v1659_v18 }
 0x1fa   : > { %v1677_v52 = vmul.f32 %v2621_v42, %v1664_v19  ;;  %1779 = vst [vmem:[%s2536_s9 + $0xb] sm:$0x1] %v1664_v19  ;;  %v1727_v42 = vld [vmem:[%s2697_s6] sm:$0x1] }
 0x1fc   : > { %v1691_v34 = vrot.slane %v1677_v52, 7  ;;  %1764 = vmatmul.f32.vlgmr.msra.gmra.mxu1 %v1677_v52  ;;  %1775 = vst [vmem:[%s2536_s9 + $0x7] sm:$0x1] %v1677_v52 }
 0x1fe   : > { %v1692_v20 = vsel %vm1681_vm5, %v2624_v61, %v1691_v34 }
 0x1ff   : > { %1694 = vst.msk [vmem:[#allocation2] sm:$0x3] %vm2637_vm6, %v1692_v20 }
 0x236   : > { %v1745_v22 = vpop.f32.mrf.mxu0 }
 0x237   : > { %v1746_v61 = vadd.f32 %v1745_v22, %v1727_v42 }
 0x279   : > { %v1765_v23 = vpop.f32.mrf.mxu1 }
 0x27a   : > { %v1766_v24 = vadd.f32 %v1765_v23, %v1746_v61 }
 0x27c   : > { %1770 = vst [vmem:[%s2536_s9 + $0x2] sm:$0x1] %v1766_v24 }
 0x27d   : > { %2291 = shalt.err (!%p2288_p10)
}
 0x27e   : > { %s2354_s12 = smov 128   ;;  %s2355_s9 = smov 8  }
 0x27f   : > { %1972 = dma.vmem_to_hbm [thread:$0]  (%p2482_p13), %s1796_s11, 256, %s1798_s16, %s1783_s17, %s2354_s12, %s2354_s12, %s2355_s9  }
 0x280 PF: > { %p2009_p11 = scmp.ge.s32.totalorder %s2342_s27, 2  ;;  %s1812_s22 = sand.u32 1, %s2330_s24  }
 0x281   : > { %s1813_s23 = scalar_lea.sflag [#allocation6], %s1812_s22 }
 0x282   : > { %p1995_p0 = pnand %p2009_p11, %p2487_p5 }
 0x284   : > { %p1996_p2 = pneg %p1995_p0 }
 0x286   : > { %2325 = dma.done.wait (%p1996_p2), %s1813_s23, 256  }
 0x287   : > { %2327 = vsyncadd (%p1996_p2), %s1813_s23, 4294967040  ;;  %p23_p6 = scmp.ge.s32.totalorder %s2462_s28, 10   ;;  %s2710_s24 = smov %s2334_s25 }
 0x288   : > { %s2711_s25 = smov %s2338_s26  ;;  %s2712_s26 = smov %s2474_s18 }
 0x289   : > { %s2713_s27 = smov %s2462_s28  ;;  %25 = sbr.rel (!%p23_p6) target bundleno = 10 (0xa), region = 117 }
 0x28e   :  { %1819 = vsyncpa [#allocation5], 1 }
 0x28f   :  { %1821 = vsyncpa [#allocation5 + $0x1], 1 }
 0x290   :  { %1822 = vsyncpa [#allocation8], 1 }
 0x291   :  { %1823 = vsyncpa [#allocation11], 1 }
 0x292   :  { %1824 = vsyncpa [#allocation14], 1 }
 0x293   :  { %1825 = vsyncpa [#allocation6], 1 }
 0x294   :  { %1827 = vsyncpa [#allocation6 + $0x1], 1 }

</bundles_post_ra>
